<compile_context>
chip_gen: v7x
topology: tpu7x:2x2x1
jax: 0.10.0
libtpu: 0.0.40
codegen_flags: <defaults>
</compile_context>

<pallas_src>
import numpy as np
import jax
import jax.numpy as jnp
from jax import lax
from jax.experimental import pallas as pl
from jax.experimental.pallas import tpu as pltpu

# ---------------- model configuration ----------------
IN_C, IN_H, IN_W = 1, 16, 16
OUT_F = 2                       # out_shape = (2,)
CH = (4, 8)
KS, PAD = 3, 1                  # same_padding(3) = 1

L0_H = L0_W = 8                 # 16 -> 8 (stride 2)
L1_H = L1_W = 4                 # 8 -> 4 (stride 2)
IN_D = IN_C * IN_H * IN_W       # 256
L0_D = CH[0] * L0_H * L0_W      # 256
L1_D = CH[1] * L1_H * L1_W      # 128  (== FC in_features)
OUT_PAD = 128                   # lane-padded FC output width
EPS = 1e-5


def _cdiv(a, b):
    return (a + b - 1) // b


def _round_up(a, b):
    return _cdiv(a, b) * b


def _choose_tile(n):
    """Batch tile: multiple of 8, capped at 256 (MXU height); for large batches keep >=2 grid
    steps so the "parallel" grid axis can shard across v7x's two TensorCores."""
    n8 = max(8, _round_up(n, 8))
    if n8 <= 16:
        return n8
    return min(256, _round_up(_cdiv(n8, 2), 8))


# ---------------- fused Pallas kernel ----------------

def _fused_forward_kernel(alpha_ref,                       # SMEM: 3 PReLU slopes
                          x_ref,                           # [TILE_M, IN_D]  distinct samples
                          w0a_ref, b0a_ref,                # layer0: [conv_u0 | residual_conv]
                          w0b_ref, b0b_ref,                # layer0 conv_u1
                          avg0_ref,                        # layer0 per-channel avg matrix
                          w1a_ref, b1a_ref,                # layer1: [conv_u0 | residual_conv]
                          w1b_ref, b1b_ref,                # layer1 conv_u1 (conv-only)
                          avg1_ref,                        # layer1 per-channel avg matrix
                          fcw_ref, fcb_ref,                # pre-sampled Bayesian W [128,128], b [1,128]
                          o_ref):                          # [TILE_M, OUT_PAD]
    f32 = jnp.float32

    def inorm_prelu(y, avg_ref, alpha):
        # InstanceNorm (biased var, eps=1e-5) + PReLU.  mean and E[x^2] are computed with a
        # SINGLE lane-dense MXU matmul by stacking [y ; y*y] along the sublane axis.
        tm = y.shape[0]
        a = avg_ref[...]
        stats = jnp.dot(jnp.concatenate([y, y * y], axis=0), a,
                        preferred_element_type=f32)            # [2*TILE_M, D]
        m = stats[:tm]
        ex2 = stats[tm:]
        var = jnp.maximum(ex2 - m * m, 0.0)                    # guard single-pass cancellation
        yn = (y - m) * lax.rsqrt(var + EPS)
        return jnp.where(yn >= 0, yn, alpha * yn)              # PReLU (ADN "NDA": N then A)

    x = x_ref[...]                                                           # [TILE_M, IN_D]

    # ---- ResidualUnit 0 : conv_u0 and residual conv fused into ONE matmul ----
    t = jnp.dot(x, w0a_ref[...], preferred_element_type=f32) + b0a_ref[...]  # [TILE_M, 2*L0_D]
    h = t[:, :L0_D]
    res = t[:, L0_D:]
    h = inorm_prelu(h, avg0_ref, alpha_ref[0])
    h = jnp.dot(h, w0b_ref[...], preferred_element_type=f32) + b0b_ref[...]
    h = inorm_prelu(h, avg0_ref, alpha_ref[1])
    h = h + res                                                              # [TILE_M, L0_D]

    # ---- ResidualUnit 1 (last; second subunit conv-only) ----
    t = jnp.dot(h, w1a_ref[...], preferred_element_type=f32) + b1a_ref[...]  # [TILE_M, 2*L1_D]
    g = t[:, :L1_D]
    res = t[:, L1_D:]
    g = inorm_prelu(g, avg1_ref, alpha_ref[2])
    g = jnp.dot(g, w1b_ref[...], preferred_element_type=f32) + b1b_ref[...]
    g = g + res                                                              # [TILE_M, L1_D] == Flatten

    # ---- BayesLinear head: weight/bias already sampled in the wrapper (lane-padded) ----
    o_ref[...] = jnp.dot(g, fcw_ref[...], preferred_element_type=f32) + fcb_ref[...]


def fused_forward(x_flat, p, fc_w, fc_b, tile_m):
    # x_flat: [N_pad, IN_D], N_pad a multiple of tile_m (distinct samples per row).
    n_pad = x_flat.shape[0]
    grid = n_pad // tile_m

    def const_spec(shape):
        zeros = (0,) * len(shape)
        # Constant (grid-invariant) operand: single-buffer it, no point double-buffering.
        return pl.BlockSpec(shape, lambda n: zeros, pipeline_mode=pl.Buffered(1))

    in_specs = [
        pl.BlockSpec(memory_space=pltpu.MemorySpace.SMEM),            # PReLU alphas
        pl.BlockSpec((tile_m, IN_D), lambda n: (n, 0)),               # per-step batch tile
        const_spec((IN_D, 2 * L0_D)), const_spec((1, 2 * L0_D)),      # w0a, b0a
        const_spec((L0_D, L0_D)),     const_spec((1, L0_D)),          # w0b, b0b
        const_spec((L0_D, L0_D)),                                     # avg0
        const_spec((L0_D, 2 * L1_D)), const_spec((1, 2 * L1_D)),      # w1a, b1a
        const_spec((L1_D, L1_D)),     const_spec((1, L1_D)),          # w1b, b1b
        const_spec((L1_D, L1_D)),                                     # avg1
        const_spec((L1_D, OUT_PAD)),  const_spec((1, OUT_PAD)),       # sampled FC weight / bias
    ]
    return pl.pallas_call(
        _fused_forward_kernel,
        grid=(grid,),
        in_specs=in_specs,
        out_specs=pl.BlockSpec((tile_m, OUT_PAD), lambda n: (n, 0)),
        out_shape=jax.ShapeDtypeStruct((n_pad, OUT_PAD), jnp.float32),
        compiler_params=pltpu.CompilerParams(
            dimension_semantics=("parallel",),       # batch grid axis -> both TCs on v7x
        ),
    )(p['alphas'], x_flat,
      p['w0a'], p['b0a'], p['w0b'], p['b0b'], p['avg0'],
      p['w1a'], p['b1a'], p['w1b'], p['b1b'], p['avg1'],
      fc_w, fc_b)


def bayesian_regressor_forward(x_nchw, params, key):
    """x: [N, 1, 16, 16] NCHW -> [N, 2]; one Bayesian weight sample per call."""
    N = x_nchw.shape[0]
    x_flat = x_nchw.reshape(N, IN_D).astype(jnp.float32)

    tile_m = _choose_tile(N)
    n_pad = _round_up(N, tile_m)
    if n_pad != N:
        x_flat = jnp.pad(x_flat, ((0, n_pad - N), (0, 0)))       # zero-pad batch (rows discarded)

    # torchbnn resamples eps ~ N(0,1) on every forward (randn_like).  Sample + build the FC
    # weight/bias ONCE per forward in the wrapper (grid-invariant), lane-pad to 128 columns.
    kw, kb = jax.random.split(key)
    w_eps = jax.random.normal(kw, (L1_D, OUT_F), jnp.float32)
    b_eps = jax.random.normal(kb, (OUT_F,), jnp.float32)
    fc_w = params['fc_wmu'] + jnp.exp(params['fc_wls']) * w_eps                # [128, 2]
    fc_b = params['fc_bmu'] + jnp.exp(params['fc_bls']) * b_eps                # [2]
    fc_w = jnp.zeros((L1_D, OUT_PAD), jnp.float32).at[:, :OUT_F].set(fc_w)
    fc_b = jnp.zeros((1, OUT_PAD), jnp.float32).at[0, :OUT_F].set(fc_b)

    out = fused_forward(x_flat, params, fc_w, fc_b, tile_m)      # [N_pad, OUT_PAD]
    return out[:N, :OUT_F]                                       # Reshape(*out_shape)


# ---------------- host-side (init-time) parameter lowering ----------------

def _conv_as_dense(w, b, in_hw, stride, pad):
    """Exact dense (Toeplitz) form of a 2-D conv, PyTorch weight layout [Cout,Cin,kh,kw]:
       out_flat(NCHW) = in_flat(NCHW) @ W_dense + b_row."""
    Cout, Cin, kh, kw = w.shape
    Hi, Wi = in_hw
    Ho = (Hi + 2 * pad - kh) // stride + 1
    Wo = (Wi + 2 * pad - kw) // stride + 1
    Wd = np.zeros((Cin * Hi * Wi, Cout * Ho * Wo), np.float32)
    for co in range(Cout):
        for ho in range(Ho):
            for wo in range(Wo):
                ocol = (co * Ho + ho) * Wo + wo
                for ci in range(Cin):
                    for dh in range(kh):
                        hi = ho * stride - pad + dh
                        if hi < 0 or hi >= Hi:
                            continue
                        for dw in range(kw):
                            wi = wo * stride - pad + dw
                            if wi < 0 or wi >= Wi:
                                continue
                            Wd[(ci * Hi + hi) * Wi + wi, ocol] = w[co, ci, dh, dw]
    b_row = np.repeat(np.asarray(b, np.float32), Ho * Wo)[None, :]
    return Wd, b_row


def _channel_avg_matrix(C, HW):
    A = np.zeros((C * HW, C * HW), np.float32)
    for c in range(C):
        A[c * HW:(c + 1) * HW, c * HW:(c + 1) * HW] = 1.0 / HW
    return A


def init_params(key):
    # TODO(synk): conv init uses normal/sqrt(fan_in), not PyTorch's exact kaiming_uniform;
    # load real torch weights here for strict parity tests (forward math itself is faithful).
    def conv_init(k, cout, cin, ks):
        k1, k2 = jax.random.split(k)
        fan_in = cin * ks * ks
        w = np.asarray(jax.random.normal(k1, (cout, cin, ks, ks), jnp.float32)) / np.sqrt(fan_in)
        b = np.asarray(jax.random.normal(k2, (cout,), jnp.float32)) * 0.01
        return w, b

    keys = jax.random.split(key, 8)

    # --- ResidualUnit 0: 1 -> 4, stride 2 (both subunits have InstanceNorm+PReLU) ---
    w_u0, b_u0 = conv_init(keys[0], CH[0], IN_C, KS)
    w_u1, b_u1 = conv_init(keys[1], CH[0], CH[0], KS)
    w_rs, b_rs = conv_init(keys[2], CH[0], IN_C, KS)       # residual conv: k=3, s=2, p=1, bias
    d_u0, r_u0 = _conv_as_dense(w_u0, b_u0, (IN_H, IN_W), 2, PAD)
    d_u1, r_u1 = _conv_as_dense(w_u1, b_u1, (L0_H, L0_W), 1, PAD)
    d_rs, r_rs = _conv_as_dense(w_rs, b_rs, (IN_H, IN_W), 2, PAD)

    # --- ResidualUnit 1 (last): 4 -> 8, stride 2 (second subunit conv-only) ---
    w_u0b, b_u0b = conv_init(keys[3], CH[1], CH[0], KS)
    w_u1b, b_u1b = conv_init(keys[4], CH[1], CH[1], KS)
    w_rsb, b_rsb = conv_init(keys[5], CH[1], CH[0], KS)
    d_u0b, r_u0b = _conv_as_dense(w_u0b, b_u0b, (L0_H, L0_W), 2, PAD)
    d_u1b, r_u1b = _conv_as_dense(w_u1b, b_u1b, (L1_H, L1_W), 1, PAD)
    d_rsb, r_rsb = _conv_as_dense(w_rsb, b_rsb, (L0_H, L0_W), 2, PAD)

    # --- BayesLinear(128 -> 2): torchbnn init, prior_mu=0.0, prior_sigma=0.1 ---
    stdv = 1.0 / np.sqrt(L1_D)
    wmu = jax.random.uniform(keys[6], (L1_D, OUT_F), jnp.float32, minval=-stdv, maxval=stdv)
    bmu = jax.random.uniform(keys[7], (OUT_F,), jnp.float32, minval=-stdv, maxval=stdv)

    return {
        'alphas': jnp.full((3,), 0.25, jnp.float32),                 # PReLU(init=0.25) per ADN
        'w0a': jnp.asarray(np.concatenate([d_u0, d_rs], axis=1)),    # [256, 512]
        'b0a': jnp.asarray(np.concatenate([r_u0, r_rs], axis=1)),    # [1, 512]
        'w0b': jnp.asarray(d_u1), 'b0b': jnp.asarray(r_u1),          # [256, 256], [1, 256]
        'avg0': jnp.asarray(_channel_avg_matrix(CH[0], L0_H * L0_W)),
        'w1a': jnp.asarray(np.concatenate([d_u0b, d_rsb], axis=1)),  # [256, 256]
        'b1a': jnp.asarray(np.concatenate([r_u0b, r_rsb], axis=1)),  # [1, 256]
        'w1b': jnp.asarray(d_u1b), 'b1b': jnp.asarray(r_u1b),        # [128, 128], [1, 128]
        'avg1': jnp.asarray(_channel_avg_matrix(CH[1], L1_H * L1_W)),
        'fc_wmu': wmu,                                               # [128, 2]
        'fc_wls': jnp.full((L1_D, OUT_F), np.log(0.1), jnp.float32),
        'fc_bmu': bmu,                                               # [2]
        'fc_bls': jnp.full((OUT_F,), np.log(0.1), jnp.float32),
    }


if __name__ == "__main__":
    root = jax.random.PRNGKey(0)
    pkey, xkey, ekey = jax.random.split(root, 3)
    params = init_params(pkey)
    x = jax.random.normal(xkey, (2, IN_C, IN_H, IN_W), jnp.float32)   # batch=2, NCHW
    fwd = jax.jit(bayesian_regressor_forward)
    out = fwd(x, params, ekey)
    out = jax.block_until_ready(out)
    assert out.shape == (2, OUT_F) and out.dtype == jnp.float32
    assert bool(jnp.all(jnp.isfinite(out)))
    print("KERNEL_OK")
</pallas_src>

<mosaic_0001>
module attributes {stable_mosaic.version = 11 : i64} {
  func.func @_fused_forward_kernel(%arg0: i32, %arg1: memref<3xf32, #tpu.memory_space<smem>>, %arg2: memref<8x256xf32, #tpu.memory_space<vmem>>, %arg3: memref<256x512xf32, #tpu.memory_space<vmem>>, %arg4: memref<1x512xf32, #tpu.memory_space<vmem>>, %arg5: memref<256x256xf32, #tpu.memory_space<vmem>>, %arg6: memref<1x256xf32, #tpu.memory_space<vmem>>, %arg7: memref<256x256xf32, #tpu.memory_space<vmem>>, %arg8: memref<256x256xf32, #tpu.memory_space<vmem>>, %arg9: memref<1x256xf32, #tpu.memory_space<vmem>>, %arg10: memref<128x128xf32, #tpu.memory_space<vmem>>, %arg11: memref<1x128xf32, #tpu.memory_space<vmem>>, %arg12: memref<128x128xf32, #tpu.memory_space<vmem>>, %arg13: memref<128x128xf32, #tpu.memory_space<vmem>>, %arg14: memref<1x128xf32, #tpu.memory_space<vmem>>, %arg15: memref<8x128xf32, #tpu.memory_space<vmem>>) attributes {dimension_semantics = [#tpu.dimension_semantics<parallel>], iteration_bounds = array<i64: 1>, scalar_prefetch = 0 : i64, scratch_operands = 0 : i64, tpu.core_type = #tpu.core_type<tc>, window_params = [{transform_indices = @transform_0, window_bounds = array<i64: 3>}, {transform_indices = @transform_1, window_bounds = array<i64: 8, 256>}, {pipeline_mode = #tpu.pipeline_mode<synchronous>, transform_indices = @transform_2, window_bounds = array<i64: 256, 512>}, {pipeline_mode = #tpu.pipeline_mode<synchronous>, transform_indices = @transform_3, window_bounds = array<i64: 1, 512>}, {pipeline_mode = #tpu.pipeline_mode<synchronous>, transform_indices = @transform_4, window_bounds = array<i64: 256, 256>}, {pipeline_mode = #tpu.pipeline_mode<synchronous>, transform_indices = @transform_5, window_bounds = array<i64: 1, 256>}, {pipeline_mode = #tpu.pipeline_mode<synchronous>, transform_indices = @transform_6, window_bounds = array<i64: 256, 256>}, {pipeline_mode = #tpu.pipeline_mode<synchronous>, transform_indices = @transform_7, window_bounds = array<i64: 256, 256>}, {pipeline_mode = #tpu.pipeline_mode<synchronous>, transform_indices = @transform_8, window_bounds = array<i64: 1, 256>}, {pipeline_mode = #tpu.pipeline_mode<synchronous>, transform_indices = @transform_9, window_bounds = array<i64: 128, 128>}, {pipeline_mode = #tpu.pipeline_mode<synchronous>, transform_indices = @transform_10, window_bounds = array<i64: 1, 128>}, {pipeline_mode = #tpu.pipeline_mode<synchronous>, transform_indices = @transform_11, window_bounds = array<i64: 128, 128>}, {pipeline_mode = #tpu.pipeline_mode<synchronous>, transform_indices = @transform_12, window_bounds = array<i64: 128, 128>}, {pipeline_mode = #tpu.pipeline_mode<synchronous>, transform_indices = @transform_13, window_bounds = array<i64: 1, 128>}, {transform_indices = @transform_14, window_bounds = array<i64: 8, 128>}]} {
    %c0 = arith.constant 0 : index
    %c0_0 = arith.constant 0 : index
    %0 = vector.load %arg2[%c0, %c0_0] : memref<8x256xf32, #tpu.memory_space<vmem>>, vector<8x256xf32>
    %c0_1 = arith.constant 0 : index
    %c0_2 = arith.constant 0 : index
    %1 = vector.load %arg3[%c0_1, %c0_2] : memref<256x512xf32, #tpu.memory_space<vmem>>, vector<256x512xf32>
    %cst = arith.constant dense<0.000000e+00> : vector<8x512xf32>
    %2 = tpu.matmul %0, %1, %cst {dimension_numbers = #tpu.dot_dimension_numbers<[1], [0], [0], [1], [0, 0, 1, 1], [], []>} : vector<8x256xf32>, vector<256x512xf32>, vector<8x512xf32> -> vector<8x512xf32>
    %c0_3 = arith.constant 0 : index
    %c0_4 = arith.constant 0 : index
    %3 = vector.load %arg4[%c0_3, %c0_4] : memref<1x512xf32, #tpu.memory_space<vmem>>, vector<1x512xf32>
    %4 = vector.broadcast %3 : vector<1x512xf32> to vector<8x512xf32>
    %5 = arith.addf %2, %4 : vector<8x512xf32>
    %6 = vector.extract_strided_slice %5 {offsets = [0, 0], sizes = [8, 256], strides = [1, 1]} : vector<8x512xf32> to vector<8x256xf32>
    %7 = vector.extract_strided_slice %5 {offsets = [0, 256], sizes = [8, 256], strides = [1, 1]} : vector<8x512xf32> to vector<8x256xf32>
    %c0_5 = arith.constant 0 : index
    %8 = memref.load %arg1[%c0_5] : memref<3xf32, #tpu.memory_space<smem>>
    %c0_6 = arith.constant 0 : index
    %c0_7 = arith.constant 0 : index
    %9 = vector.load %arg7[%c0_6, %c0_7] : memref<256x256xf32, #tpu.memory_space<vmem>>, vector<256x256xf32>
    %10 = arith.mulf %6, %6 : vector<8x256xf32>
    %11 = tpu.concatenate %6, %10 in 0 : vector<8x256xf32>, vector<8x256xf32> -> vector<16x256xf32>
    %cst_8 = arith.constant dense<0.000000e+00> : vector<16x256xf32>
    %12 = tpu.matmul %11, %9, %cst_8 {dimension_numbers = #tpu.dot_dimension_numbers<[1], [0], [0], [1], [0, 0, 1, 1], [], []>} : vector<16x256xf32>, vector<256x256xf32>, vector<16x256xf32> -> vector<16x256xf32>
    %13 = vector.extract_strided_slice %12 {offsets = [0, 0], sizes = [8, 256], strides = [1, 1]} : vector<16x256xf32> to vector<8x256xf32>
    %14 = vector.extract_strided_slice %12 {offsets = [8, 0], sizes = [8, 256], strides = [1, 1]} : vector<16x256xf32> to vector<8x256xf32>
    %15 = arith.mulf %13, %13 : vector<8x256xf32>
    %16 = arith.subf %14, %15 : vector<8x256xf32>
    %cst_9 = arith.constant 0.000000e+00 : f32
    %17 = vector.broadcast %cst_9 : f32 to vector<8x256xf32>
    %18 = arith.maximumf %16, %17 : vector<8x256xf32>
    %19 = arith.subf %6, %13 : vector<8x256xf32>
    %cst_10 = arith.constant 9.99999974E-6 : f32
    %20 = vector.broadcast %cst_10 : f32 to vector<8x256xf32>
    %21 = arith.addf %18, %20 : vector<8x256xf32>
    %22 = math.rsqrt %21 : vector<8x256xf32>
    %23 = arith.mulf %19, %22 : vector<8x256xf32>
    %cst_11 = arith.constant 0.000000e+00 : f32
    %24 = vector.broadcast %cst_11 : f32 to vector<8x256xf32>
    %25 = arith.cmpf oge, %23, %24 : vector<8x256xf32>
    %26 = vector.broadcast %8 : f32 to vector<8x256xf32>
    %27 = arith.mulf %26, %23 : vector<8x256xf32>
    %28 = arith.select %25, %23, %27 : vector<8x256xi1>, vector<8x256xf32>
    %c0_12 = arith.constant 0 : index
    %c0_13 = arith.constant 0 : index
    %29 = vector.load %arg5[%c0_12, %c0_13] : memref<256x256xf32, #tpu.memory_space<vmem>>, vector<256x256xf32>
    %cst_14 = arith.constant dense<0.000000e+00> : vector<8x256xf32>
    %30 = tpu.matmul %28, %29, %cst_14 {dimension_numbers = #tpu.dot_dimension_numbers<[1], [0], [0], [1], [0, 0, 1, 1], [], []>} : vector<8x256xf32>, vector<256x256xf32>, vector<8x256xf32> -> vector<8x256xf32>
    %c0_15 = arith.constant 0 : index
    %c0_16 = arith.constant 0 : index
    %31 = vector.load %arg6[%c0_15, %c0_16] : memref<1x256xf32, #tpu.memory_space<vmem>>, vector<1x256xf32>
    %32 = vector.broadcast %31 : vector<1x256xf32> to vector<8x256xf32>
    %33 = arith.addf %30, %32 : vector<8x256xf32>
    %c1 = arith.constant 1 : index
    %34 = memref.load %arg1[%c1] : memref<3xf32, #tpu.memory_space<smem>>
    %c0_17 = arith.constant 0 : index
    %c0_18 = arith.constant 0 : index
    %35 = vector.load %arg7[%c0_17, %c0_18] : memref<256x256xf32, #tpu.memory_space<vmem>>, vector<256x256xf32>
    %36 = arith.mulf %33, %33 : vector<8x256xf32>
    %37 = tpu.concatenate %33, %36 in 0 : vector<8x256xf32>, vector<8x256xf32> -> vector<16x256xf32>
    %cst_19 = arith.constant dense<0.000000e+00> : vector<16x256xf32>
    %38 = tpu.matmul %37, %35, %cst_19 {dimension_numbers = #tpu.dot_dimension_numbers<[1], [0], [0], [1], [0, 0, 1, 1], [], []>} : vector<16x256xf32>, vector<256x256xf32>, vector<16x256xf32> -> vector<16x256xf32>
    %39 = vector.extract_strided_slice %38 {offsets = [0, 0], sizes = [8, 256], strides = [1, 1]} : vector<16x256xf32> to vector<8x256xf32>
    %40 = vector.extract_strided_slice %38 {offsets = [8, 0], sizes = [8, 256], strides = [1, 1]} : vector<16x256xf32> to vector<8x256xf32>
    %41 = arith.mulf %39, %39 : vector<8x256xf32>
    %42 = arith.subf %40, %41 : vector<8x256xf32>
    %cst_20 = arith.constant 0.000000e+00 : f32
    %43 = vector.broadcast %cst_20 : f32 to vector<8x256xf32>
    %44 = arith.maximumf %42, %43 : vector<8x256xf32>
    %45 = arith.subf %33, %39 : vector<8x256xf32>
    %cst_21 = arith.constant 9.99999974E-6 : f32
    %46 = vector.broadcast %cst_21 : f32 to vector<8x256xf32>
    %47 = arith.addf %44, %46 : vector<8x256xf32>
    %48 = math.rsqrt %47 : vector<8x256xf32>
    %49 = arith.mulf %45, %48 : vector<8x256xf32>
    %cst_22 = arith.constant 0.000000e+00 : f32
    %50 = vector.broadcast %cst_22 : f32 to vector<8x256xf32>
    %51 = arith.cmpf oge, %49, %50 : vector<8x256xf32>
    %52 = vector.broadcast %34 : f32 to vector<8x256xf32>
    %53 = arith.mulf %52, %49 : vector<8x256xf32>
    %54 = arith.select %51, %49, %53 : vector<8x256xi1>, vector<8x256xf32>
    %55 = arith.addf %54, %7 : vector<8x256xf32>
    %c0_23 = arith.constant 0 : index
    %c0_24 = arith.constant 0 : index
    %56 = vector.load %arg8[%c0_23, %c0_24] : memref<256x256xf32, #tpu.memory_space<vmem>>, vector<256x256xf32>
    %cst_25 = arith.constant dense<0.000000e+00> : vector<8x256xf32>
    %57 = tpu.matmul %55, %56, %cst_25 {dimension_numbers = #tpu.dot_dimension_numbers<[1], [0], [0], [1], [0, 0, 1, 1], [], []>} : vector<8x256xf32>, vector<256x256xf32>, vector<8x256xf32> -> vector<8x256xf32>
    %c0_26 = arith.constant 0 : index
    %c0_27 = arith.constant 0 : index
    %58 = vector.load %arg9[%c0_26, %c0_27] : memref<1x256xf32, #tpu.memory_space<vmem>>, vector<1x256xf32>
    %59 = vector.broadcast %58 : vector<1x256xf32> to vector<8x256xf32>
    %60 = arith.addf %57, %59 : vector<8x256xf32>
    %61 = vector.extract_strided_slice %60 {offsets = [0, 0], sizes = [8, 128], strides = [1, 1]} : vector<8x256xf32> to vector<8x128xf32>
    %62 = vector.extract_strided_slice %60 {offsets = [0, 128], sizes = [8, 128], strides = [1, 1]} : vector<8x256xf32> to vector<8x128xf32>
    %c2 = arith.constant 2 : index
    %63 = memref.load %arg1[%c2] : memref<3xf32, #tpu.memory_space<smem>>
    %c0_28 = arith.constant 0 : index
    %c0_29 = arith.constant 0 : index
    %64 = vector.load %arg12[%c0_28, %c0_29] : memref<128x128xf32, #tpu.memory_space<vmem>>, vector<128x128xf32>
    %65 = arith.mulf %61, %61 : vector<8x128xf32>
    %66 = tpu.concatenate %61, %65 in 0 : vector<8x128xf32>, vector<8x128xf32> -> vector<16x128xf32>
    %cst_30 = arith.constant dense<0.000000e+00> : vector<16x128xf32>
    %67 = tpu.matmul %66, %64, %cst_30 {dimension_numbers = #tpu.dot_dimension_numbers<[1], [0], [0], [1], [0, 0, 1, 1], [], []>} : vector<16x128xf32>, vector<128x128xf32>, vector<16x128xf32> -> vector<16x128xf32>
    %68 = vector.extract_strided_slice %67 {offsets = [0, 0], sizes = [8, 128], strides = [1, 1]} : vector<16x128xf32> to vector<8x128xf32>
    %69 = vector.extract_strided_slice %67 {offsets = [8, 0], sizes = [8, 128], strides = [1, 1]} : vector<16x128xf32> to vector<8x128xf32>
    %70 = arith.mulf %68, %68 : vector<8x128xf32>
    %71 = arith.subf %69, %70 : vector<8x128xf32>
    %cst_31 = arith.constant 0.000000e+00 : f32
    %72 = vector.broadcast %cst_31 : f32 to vector<8x128xf32>
    %73 = arith.maximumf %71, %72 : vector<8x128xf32>
    %74 = arith.subf %61, %68 : vector<8x128xf32>
    %cst_32 = arith.constant 9.99999974E-6 : f32
    %75 = vector.broadcast %cst_32 : f32 to vector<8x128xf32>
    %76 = arith.addf %73, %75 : vector<8x128xf32>
    %77 = math.rsqrt %76 : vector<8x128xf32>
    %78 = arith.mulf %74, %77 : vector<8x128xf32>
    %cst_33 = arith.constant 0.000000e+00 : f32
    %79 = vector.broadcast %cst_33 : f32 to vector<8x128xf32>
    %80 = arith.cmpf oge, %78, %79 : vector<8x128xf32>
    %81 = vector.broadcast %63 : f32 to vector<8x128xf32>
    %82 = arith.mulf %81, %78 : vector<8x128xf32>
    %83 = arith.select %80, %78, %82 : vector<8x128xi1>, vector<8x128xf32>
    %c0_34 = arith.constant 0 : index
    %c0_35 = arith.constant 0 : index
    %84 = vector.load %arg10[%c0_34, %c0_35] : memref<128x128xf32, #tpu.memory_space<vmem>>, vector<128x128xf32>
    %cst_36 = arith.constant dense<0.000000e+00> : vector<8x128xf32>
    %85 = tpu.matmul %83, %84, %cst_36 {dimension_numbers = #tpu.dot_dimension_numbers<[1], [0], [0], [1], [0, 0, 1, 1], [], []>} : vector<8x128xf32>, vector<128x128xf32>, vector<8x128xf32> -> vector<8x128xf32>
    %c0_37 = arith.constant 0 : index
    %c0_38 = arith.constant 0 : index
    %86 = vector.load %arg11[%c0_37, %c0_38] : memref<1x128xf32, #tpu.memory_space<vmem>>, vector<1x128xf32>
    %87 = vector.broadcast %86 : vector<1x128xf32> to vector<8x128xf32>
    %88 = arith.addf %85, %87 : vector<8x128xf32>
    %89 = arith.addf %88, %62 : vector<8x128xf32>
    %c0_39 = arith.constant 0 : index
    %c0_40 = arith.constant 0 : index
    %90 = vector.load %arg13[%c0_39, %c0_40] : memref<128x128xf32, #tpu.memory_space<vmem>>, vector<128x128xf32>
    %cst_41 = arith.constant dense<0.000000e+00> : vector<8x128xf32>
    %91 = tpu.matmul %89, %90, %cst_41 {dimension_numbers = #tpu.dot_dimension_numbers<[1], [0], [0], [1], [0, 0, 1, 1], [], []>} : vector<8x128xf32>, vector<128x128xf32>, vector<8x128xf32> -> vector<8x128xf32>
    %c0_42 = arith.constant 0 : index
    %c0_43 = arith.constant 0 : index
    %92 = vector.load %arg14[%c0_42, %c0_43] : memref<1x128xf32, #tpu.memory_space<vmem>>, vector<1x128xf32>
    %93 = vector.broadcast %92 : vector<1x128xf32> to vector<8x128xf32>
    %94 = arith.addf %91, %93 : vector<8x128xf32>
    %c0_44 = arith.constant 0 : index
    %c0_45 = arith.constant 0 : index
    %95 = vector.load %arg15[%c0_44, %c0_45] : memref<8x128xf32, #tpu.memory_space<vmem>>, vector<8x128xf32>
    tpu.vector_store %arg15[%c0_44, %c0_45], %94 {strides = array<i32>} : memref<8x128xf32, #tpu.memory_space<vmem>>, vector<8x128xf32>,
    return
  }
  func.func @transform_0(%arg0: i32) -> i32 {
    %c0_i32 = arith.constant 0 : i32
    %c0_i32_0 = arith.constant 0 : i32
    return %c0_i32 : i32
  }
  func.func @transform_1(%arg0: i32) -> (i32, i32) {
    %c0_i32 = arith.constant 0 : i32
    %c0_i32_0 = arith.constant 0 : i32
    return %arg0, %c0_i32 : i32, i32
  }
  func.func @transform_2(%arg0: i32) -> (i32, i32) {
    %c0_i32 = arith.constant 0 : i32
    %c0_i32_0 = arith.constant 0 : i32
    %c0_i32_1 = arith.constant 0 : i32
    return %c0_i32, %c0_i32_0 : i32, i32
  }
  func.func @transform_3(%arg0: i32) -> (i32, i32) {
    %c0_i32 = arith.constant 0 : i32
    %c0_i32_0 = arith.constant 0 : i32
    %c0_i32_1 = arith.constant 0 : i32
    return %c0_i32, %c0_i32_0 : i32, i32
  }
  func.func @transform_4(%arg0: i32) -> (i32, i32) {
    %c0_i32 = arith.constant 0 : i32
    %c0_i32_0 = arith.constant 0 : i32
    %c0_i32_1 = arith.constant 0 : i32
    return %c0_i32, %c0_i32_0 : i32, i32
  }
  func.func @transform_5(%arg0: i32) -> (i32, i32) {
    %c0_i32 = arith.constant 0 : i32
    %c0_i32_0 = arith.constant 0 : i32
    %c0_i32_1 = arith.constant 0 : i32
    return %c0_i32, %c0_i32_0 : i32, i32
  }
  func.func @transform_6(%arg0: i32) -> (i32, i32) {
    %c0_i32 = arith.constant 0 : i32
    %c0_i32_0 = arith.constant 0 : i32
    %c0_i32_1 = arith.constant 0 : i32
    return %c0_i32, %c0_i32_0 : i32, i32
  }
  func.func @transform_7(%arg0: i32) -> (i32, i32) {
    %c0_i32 = arith.constant 0 : i32
    %c0_i32_0 = arith.constant 0 : i32
    %c0_i32_1 = arith.constant 0 : i32
    return %c0_i32, %c0_i32_0 : i32, i32
  }
  func.func @transform_8(%arg0: i32) -> (i32, i32) {
    %c0_i32 = arith.constant 0 : i32
    %c0_i32_0 = arith.constant 0 : i32
    %c0_i32_1 = arith.constant 0 : i32
    return %c0_i32, %c0_i32_0 : i32, i32
  }
  func.func @transform_9(%arg0: i32) -> (i32, i32) {
    %c0_i32 = arith.constant 0 : i32
    %c0_i32_0 = arith.constant 0 : i32
    %c0_i32_1 = arith.constant 0 : i32
    return %c0_i32, %c0_i32_0 : i32, i32
  }
  func.func @transform_10(%arg0: i32) -> (i32, i32) {
    %c0_i32 = arith.constant 0 : i32
    %c0_i32_0 = arith.constant 0 : i32
    %c0_i32_1 = arith.constant 0 : i32
    return %c0_i32, %c0_i32_0 : i32, i32
  }
  func.func @transform_11(%arg0: i32) -> (i32, i32) {
    %c0_i32 = arith.constant 0 : i32
    %c0_i32_0 = arith.constant 0 : i32
    %c0_i32_1 = arith.constant 0 : i32
    return %c0_i32, %c0_i32_0 : i32, i32
  }
  func.func @transform_12(%arg0: i32) -> (i32, i32) {
    %c0_i32 = arith.constant 0 : i32
    %c0_i32_0 = arith.constant 0 : i32
    %c0_i32_1 = arith.constant 0 : i32
    return %c0_i32, %c0_i32_0 : i32, i32
  }
  func.func @transform_13(%arg0: i32) -> (i32, i32) {
    %c0_i32 = arith.constant 0 : i32
    %c0_i32_0 = arith.constant 0 : i32
    %c0_i32_1 = arith.constant 0 : i32
    return %c0_i32, %c0_i32_0 : i32, i32
  }
  func.func @transform_14(%arg0: i32) -> (i32, i32) {
    %c0_i32 = arith.constant 0 : i32
    %c0_i32_0 = arith.constant 0 : i32
    return %arg0, %c0_i32 : i32, i32
  }
}

</mosaic_0001>

<bundles_post_ra>
// kernel: bayesian_regressor_forward.11
= control target key start
LH: loop header
LB: loop body
LE: loop exit
PB: predicated region body
PF: predicated region fallthrough
CT: control target
= control target key end

     0   :  { %19 = vsyncpa [#allocation4], 0  ;;  %s2888_s0 = inlined_call_operand.vmem [shape: f32[3], index: 0, kind: input, shape index: {}]   ;;  %s2889_s1 = inlined_call_operand.vmem [shape: f32[8,256], index: 1, kind: input, shape index: {}]   ;;  %s2890_s2 = inlined_call_operand.vmem [shape: f32[256,512], index: 2, kind: input, shape index: {}]   ;;  %s2891_s3 = inlined_call_operand.vmem [shape: f32[1,512], index: 3, kind: input, shape index: {}]   ;;  %s2892_s4 = inlined_call_operand.hbm [shape: f32[256,256], index: 4, kind: input, shape index: {}]   ;;  %s2893_s5 = inlined_call_operand.vmem [shape: f32[1,256], index: 5, kind: input, shape index: {}]   ;;  %s2894_s6 = inlined_call_operand.hbm [shape: f32[256,256], index: 6, kind: input, shape index: {}]   ;;  %s2895_s7 = inlined_call_operand.hbm [shape: f32[256,256], index: 7, kind: input, shape index: {}]   ;;  %s2896_s8 = inlined_call_operand.vmem [shape: f32[1,256], index: 8, kind: input, shape index: {}]   ;;  %s2897_s9 = inlined_call_operand.vmem [shape: f32[128,128], index: 9, kind: input, shape index: {}]   ;;  %s2898_s10 = inlined_call_operand.vmem [shape: f32[1,128], index: 10, kind: input, shape index: {}]   ;;  %s2899_s11 = inlined_call_operand.vmem [shape: f32[128,128], index: 11, kind: input, shape index: {}]   ;;  %s2900_s12 = inlined_call_operand.vmem [shape: f32[128,128], index: 12, kind: input, shape index: {}]   ;;  %s2901_s13 = inlined_call_operand.vmem [shape: f32[1,128], index: 13, kind: input, shape index: {}]   ;;  %s2902_s14 = inlined_call_operand.vmem [shape: f32[8,128], index: 14, kind: output, shape index: {}]  }
   0x1   :  { %20 = vsyncpa [#allocation3], 0 }
   0x2   :  { %21 = vsyncpa [#allocation7], 0  ;;  %s28_s15 = sshll.u32 %s2888_s0, 4  ;;  %s1984_s16 = smov [#allocation6]   ;;  %s29_s15 = int_to_ptr.vmem [resolvable:$true] %s28_s15 }
   0x3   :  { %s57_s17 = sshll.u32 %s1984_s16, 4  ;;  %s1900_s20 = scalar_lea.hbm %s2894_s6, 8192  ;;  %s58_s17 = int_to_ptr.vmem [resolvable:$true] %s57_s17 }
   0x4   :  { %p1901_p0 = scmp.ne.s32.totalorder %s2894_s6, %s1900_s20  ;;  %p1904_p1 = scmp.lt.u32.totalorder %s1900_s20, %s2894_s6 }
   0x6   :  { %p1906_p2 = pnand %p1904_p1, %p1901_p0 }
   0x8   :  { %1909 = shalt.err (!%p1906_p2)
}
   0x9   :  { %s1910_s25 = scalar_lea.vmem %s58_s17, 8192  ;;  %p1915_p4 = scmp.lt.s32.totalorder %s58_s17, %s58_s17 }
   0xa   :  { %p1911_p3 = scmp.ne.s32.totalorder %s58_s17, %s1910_s25  ;;  %p1916_p5 = scmp.lt.s32.totalorder %s1910_s25, %s1910_s25 }
   0xc   :  { %p1917_p6 = por %p1916_p5, %p1915_p4 }
   0xe   :  { %p1918_p7 = pnand %p1917_p6, %p1911_p3 }
  0x10   :  { %1921 = shalt.err (!%p1918_p7)
}
  0x11   :  { %s1985_s0 = smov 256   ;;  %s1986_s26 = smov 16  }
  0x12   :  { %63 = dma.hbm_to_vmem [thread:$0]  %s2894_s6, 8192, %s58_s17, [#allocation7], %s1985_s0, %s1985_s0, %s1986_s26  }
  0x13   :  { %s1922_s29 = scalar_lea.vmem %s29_s15, 16  ;;  %p1927_p9 = scmp.lt.s32.totalorder %s29_s15, %s29_s15 }
  0x14   :  { %p1923_p8 = scmp.ne.s32.totalorder %s29_s15, %s1922_s29  ;;  %p1928_p10 = scmp.lt.s32.totalorder %s1922_s29, %s1922_s29 }
  0x16   :  { %p1929_p11 = por %p1928_p10, %p1927_p9 }
  0x18   :  { %p1930_p12 = pnand %p1929_p11, %p1923_p8 }
  0x1a   :  { %1933 = shalt.err (!%p1930_p12)
}
  0x1b   :  { %s1987_s30 = smov [#allocation2]   ;;  %s1988_s16 = smov [#allocation5]  }
  0x1c   :  { %31 = dma.vmem_to_smem %s29_s15, 16, %s1987_s30, [#allocation4]  }
  0x1d   :  { %s43_s18 = sshll.u32 %s1988_s16, 4  ;;  %s1989_s19 = smov [#allocation8]   ;;  %s44_s18 = int_to_ptr.vmem [resolvable:$true] %s43_s18 }
  0x1e   :  { %s69_s20 = sshll.u32 %s1989_s19, 4  ;;  %s1934_s6 = scalar_lea.hbm %s2892_s4, 8192  ;;  %s2086_s20 = int_to_ptr.vmem [resolvable:$true] %s69_s20 }
  0x1f   :  { %p1935_p13 = scmp.ne.s32.totalorder %s2892_s4, %s1934_s6  ;;  %p1938_p0 = scmp.lt.u32.totalorder %s1934_s6, %s2892_s4 }
  0x21   :  { %p1940_p1 = pnand %p1938_p0, %p1935_p13 }
  0x23   :  { %1943 = shalt.err (!%p1940_p1)
}
  0x24   :  { %s1944_s15 = scalar_lea.vmem %s44_s18, 8192  ;;  %p1949_p3 = scmp.lt.s32.totalorder %s44_s18, %s44_s18 }
  0x25   :  { %p1945_p2 = scmp.ne.s32.totalorder %s44_s18, %s1944_s15  ;;  %p1950_p4 = scmp.lt.s32.totalorder %s1944_s15, %s1944_s15 }
  0x27   :  { %p1951_p5 = por %p1950_p4, %p1949_p3 }
  0x29   :  { %p1952_p6 = pnand %p1951_p5, %p1945_p2 }
  0x2b   :  { %1955 = shalt.err (!%p1952_p6)
}
  0x2c   :  { %49 = dma.hbm_to_vmem [thread:$0]  %s2892_s4, 8192, %s44_s18, [#allocation3], %s1985_s0, %s1985_s0, %s1986_s26  }
  0x2d   :  { %s1956_s16 = scalar_lea.hbm %s2895_s7, 8192 }
  0x2e   :  { %p1957_p7 = scmp.ne.s32.totalorder %s2895_s7, %s1956_s16  ;;  %p1960_p8 = scmp.lt.u32.totalorder %s1956_s16, %s2895_s7 }
  0x30   :  { %p1962_p9 = pnand %p1960_p8, %p1957_p7 }
  0x32   :  { %1965 = shalt.err (!%p1962_p9)
}
  0x33   :  { %s1966_s17 = scalar_lea.vmem %s2086_s20, 8192  ;;  %p1971_p11 = scmp.lt.s32.totalorder %s2086_s20, %s2086_s20 }
  0x34   :  { %p1967_p10 = scmp.ne.s32.totalorder %s2086_s20, %s1966_s17  ;;  %p1972_p12 = scmp.lt.s32.totalorder %s1966_s17, %s1966_s17 }
  0x36   :  { %p1973_p13 = por %p1972_p12, %p1971_p11 }
  0x38   :  { %p1974_p0 = pnand %p1973_p13, %p1967_p10 }
  0x3a   :  { %1977 = shalt.err (!%p1974_p0)
}
  0x3b   :  { %75 = dma.hbm_to_vmem [thread:$0]  %s2895_s7, 8192, %s2086_s20, [#allocation7], %s1985_s0, %s1985_s0, %s1986_s26  }
  0x3c   :  { %1978 = dma.done.wait [#allocation4], 16  }
  0x3d   :  { %1979 = vsyncadd [#allocation4], 4294967280 }
  0x3e   :  { %1980 = dma.done.wait [#allocation3], 8192  }
  0x3f   :  { %1981 = vsyncadd [#allocation3], 4294959104 }
  0x40   :  { %1982 = dma.done.wait [#allocation7], 16384  }
  0x41   :  { %1983 = vsyncadd [#allocation7], 4294950912 }
  0x42   :  { %100 = sfence }
  0x43   :  { %v104_v0 = vld [vmem:[%s2890_s2 + $0x8] sm:$0xff]  ;;  %v103_v2 = vld [vmem:[%s2890_s2] sm:$0xff]  ;;  %s1256_s18 = sld [smem:[#allocation2 + $0x1]]  ;;  %vm1991_vm4 = vmmov 0  }
  0x44   :  { %v108_v1 = vld [vmem:[%s2890_s2 + $0x28] sm:$0xff]  ;;  %v107_v4 = vld [vmem:[%s2890_s2 + $0x20] sm:$0xff] }
  0x45   :  { %v1417_v3 = vpack.c.bf16 %v108_v1, %v104_v0  ;;  %v112_v5 = vld [vmem:[%s2890_s2 + $0x48] sm:$0xff]  ;;  %v1419_v7 = vpack.c.bf16 %v107_v4, %v103_v2  ;;  %v111_v9 = vld [vmem:[%s2890_s2 + $0x40] sm:$0xff] }
  0x46   :  { %v116_v6 = vld [vmem:[%s2890_s2 + $0x68] sm:$0xff]  ;;  %v115_v10 = vld [vmem:[%s2890_s2 + $0x60] sm:$0xff] }
  0x47   :  { %v1421_v8 = vpack.c.bf16 %v116_v6, %v112_v5  ;;  %v120_v11 = vld [vmem:[%s2890_s2 + $0x88] sm:$0xff]  ;;  %1418 = vmatprep.subr.bf16.mxu0 %v1417_v3  ;;  %v1423_v13 = vpack.c.bf16 %v115_v10, %v111_v9  ;;  %v119_v15 = vld [vmem:[%s2890_s2 + $0x80] sm:$0xff] }
  0x48   :  { %v124_v12 = vld [vmem:[%s2890_s2 + $0xa8] sm:$0xff]  ;;  %1420 = vmatpush1.bf16.msra.mxu0 %v1419_v7  ;;  %v123_v16 = vld [vmem:[%s2890_s2 + $0xa0] sm:$0xff] }
  0x49   :  { %1422 = vmatprep.subr.bf16.mxu0 %v1421_v8  ;;  %v1425_v14 = vpack.c.bf16 %v124_v12, %v120_v11  ;;  %v128_v17 = vld [vmem:[%s2890_s2 + $0xc8] sm:$0xff]  ;;  %v1427_v19 = vpack.c.bf16 %v123_v16, %v119_v15  ;;  %v127_v21 = vld [vmem:[%s2890_s2 + $0xc0] sm:$0xff] }
  0x4a   :  { %v132_v18 = vld [vmem:[%s2890_s2 + $0xe8] sm:$0xff]  ;;  %v131_v22 = vld [vmem:[%s2890_s2 + $0xe0] sm:$0xff] }
  0x4b   :  { %v1429_v20 = vpack.c.bf16 %v132_v18, %v128_v17  ;;  %v136_v23 = vld [vmem:[%s2890_s2 + $0x108] sm:$0xff]  ;;  %v1431_v25 = vpack.c.bf16 %v131_v22, %v127_v21  ;;  %v135_v27 = vld [vmem:[%s2890_s2 + $0x100] sm:$0xff] }
  0x4c   :  { %1424 = vmatpush1.bf16.msra.mxu0 %v1423_v13  ;;  %v140_v24 = vld [vmem:[%s2890_s2 + $0x128] sm:$0xff]  ;;  %v139_v28 = vld [vmem:[%s2890_s2 + $0x120] sm:$0xff] }
  0x4d   :  { %1426 = vmatprep.subr.bf16.mxu0 %v1425_v14  ;;  %v1433_v26 = vpack.c.bf16 %v140_v24, %v136_v23  ;;  %v144_v29 = vld [vmem:[%s2890_s2 + $0x148] sm:$0xff]  ;;  %v1435_v31 = vpack.c.bf16 %v139_v28, %v135_v27  ;;  %v143_v33 = vld [vmem:[%s2890_s2 + $0x140] sm:$0xff] }
  0x4e   :  { %v148_v30 = vld [vmem:[%s2890_s2 + $0x168] sm:$0xff]  ;;  %v147_v34 = vld [vmem:[%s2890_s2 + $0x160] sm:$0xff] }
  0x4f   :  { %v1437_v32 = vpack.c.bf16 %v148_v30, %v144_v29  ;;  %v152_v35 = vld [vmem:[%s2890_s2 + $0x188] sm:$0xff]  ;;  %v1439_v37 = vpack.c.bf16 %v147_v34, %v143_v33  ;;  %v151_v39 = vld [vmem:[%s2890_s2 + $0x180] sm:$0xff]  ;;  %v399_v33 = vld [vmem:[#allocation6 + $0x18] sm:$0xff] }
  0x50   :  { %1428 = vmatpush1.bf16.msra.mxu0 %v1427_v19  ;;  %v156_v36 = vld [vmem:[%s2890_s2 + $0x1a8] sm:$0xff]  ;;  %v155_v40 = vld [vmem:[%s2890_s2 + $0x1a0] sm:$0xff] }
  0x51   :  { %1430 = vmatprep.subr.bf16.mxu0 %v1429_v20  ;;  %v1441_v38 = vpack.c.bf16 %v156_v36, %v152_v35  ;;  %v102_v41 = vld [vmem:[%s2889_s1 + $0x8] sm:$0xff]  ;;  %v1443_v44 = vpack.c.bf16 %v155_v40, %v151_v39  ;;  %v159_v46 = vld [vmem:[%s2890_s2 + $0x1c0] sm:$0xff]  ;;  %v403_v39 = vld [vmem:[#allocation6 + $0x38] sm:$0xff] }
  0x52   :  { %v160_v42 = vld [vmem:[%s2890_s2 + $0x1c8] sm:$0xff]  ;;  %317 = vmatprep.mubr.f32.mxu0 %v102_v41  ;;  %388 = vmatprep.mubr.f32.mxu1 %v102_v41  ;;  %v163_v47 = vld [vmem:[%s2890_s2 + $0x1e0] sm:$0xff] }
  0x53   :  { %v164_v43 = vld [vmem:[%s2890_s2 + $0x1e8] sm:$0xff]  ;;  %v1447_v50 = vpack.c.bf16 %v163_v47, %v159_v46  ;;  %v167_v52 = vld [vmem:[%s2890_s2 + $0x200] sm:$0xff]  ;;  %v407_v46 = vld [vmem:[#allocation6 + $0x58] sm:$0xff] }
  0x54   :  { %1432 = vmatpush1.bf16.msra.mxu0 %v1431_v25  ;;  %v1445_v45 = vpack.c.bf16 %v164_v43, %v160_v42  ;;  %v168_v48 = vld [vmem:[%s2890_s2 + $0x208] sm:$0xff]  ;;  %v171_v53 = vld [vmem:[%s2890_s2 + $0x220] sm:$0xff] }
  0x55   :  { %1434 = vmatprep.subr.bf16.mxu0 %v1433_v26  ;;  %v172_v49 = vld [vmem:[%s2890_s2 + $0x228] sm:$0xff]  ;;  %v1451_v56 = vpack.c.bf16 %v171_v53, %v167_v52  ;;  %v175_v58 = vld [vmem:[%s2890_s2 + $0x240] sm:$0xff]  ;;  %v411_v52 = vld [vmem:[#allocation6 + $0x78] sm:$0xff] }
  0x56   :  { %v1449_v51 = vpack.c.bf16 %v172_v49, %v168_v48  ;;  %v176_v54 = vld [vmem:[%s2890_s2 + $0x248] sm:$0xff]  ;;  %v179_v59 = vld [vmem:[%s2890_s2 + $0x260] sm:$0xff] }
  0x57   :  { %v180_v55 = vld [vmem:[%s2890_s2 + $0x268] sm:$0xff]  ;;  %v1455_v62 = vpack.c.bf16 %v179_v59, %v175_v58  ;;  %v183_v0 = vld [vmem:[%s2890_s2 + $0x280] sm:$0xff]  ;;  %v415_v58 = vld [vmem:[#allocation6 + $0x98] sm:$0xff] }
  0x58   :  { %1436 = vmatpush1.bf16.msra.mxu0 %v1435_v31  ;;  %v1453_v57 = vpack.c.bf16 %v180_v55, %v176_v54  ;;  %v184_v60 = vld [vmem:[%s2890_s2 + $0x288] sm:$0xff]  ;;  %v187_v1 = vld [vmem:[%s2890_s2 + $0x2a0] sm:$0xff] }
  0x59   :  { %1438 = vmatprep.subr.bf16.mxu0 %v1437_v32  ;;  %v188_v61 = vld [vmem:[%s2890_s2 + $0x2a8] sm:$0xff]  ;;  %v1459_v4 = vpack.c.bf16 %v187_v1, %v183_v0  ;;  %v191_v6 = vld [vmem:[%s2890_s2 + $0x2c0] sm:$0xff]  ;;  %v419_v0 = vld [vmem:[#allocation6 + $0xb8] sm:$0xff] }
  0x5a   :  { %v1457_v63 = vpack.c.bf16 %v188_v61, %v184_v60  ;;  %v192_v2 = vld [vmem:[%s2890_s2 + $0x2c8] sm:$0xff]  ;;  %v195_v7 = vld [vmem:[%s2890_s2 + $0x2e0] sm:$0xff] }
  0x5b   :  { %v196_v3 = vld [vmem:[%s2890_s2 + $0x2e8] sm:$0xff]  ;;  %v1463_v10 = vpack.c.bf16 %v195_v7, %v191_v6  ;;  %v199_v12 = vld [vmem:[%s2890_s2 + $0x300] sm:$0xff]  ;;  %v423_v6 = vld [vmem:[#allocation6 + $0xd8] sm:$0xff] }
  0x5c   :  { %1440 = vmatpush1.bf16.msra.mxu0 %v1439_v37  ;;  %v1461_v5 = vpack.c.bf16 %v196_v3, %v192_v2  ;;  %v200_v8 = vld [vmem:[%s2890_s2 + $0x308] sm:$0xff]  ;;  %v203_v13 = vld [vmem:[%s2890_s2 + $0x320] sm:$0xff]  ;;  %v398_v37 = vld [vmem:[#allocation6 + $0x10] sm:$0xff] }
  0x5d   :  { %1442 = vmatprep.subr.bf16.mxu0 %v1441_v38  ;;  %v204_v9 = vld [vmem:[%s2890_s2 + $0x328] sm:$0xff]  ;;  %v1467_v16 = vpack.c.bf16 %v203_v13, %v199_v12  ;;  %v207_v18 = vld [vmem:[%s2890_s2 + $0x340] sm:$0xff]  ;;  %v427_v12 = vld [vmem:[#allocation6 + $0xf8] sm:$0xff] }
  0x5e   :  { %v1465_v11 = vpack.c.bf16 %v204_v9, %v200_v8  ;;  %v208_v14 = vld [vmem:[%s2890_s2 + $0x348] sm:$0xff]  ;;  %v211_v19 = vld [vmem:[%s2890_s2 + $0x360] sm:$0xff] }
  0x5f   :  { %v212_v15 = vld [vmem:[%s2890_s2 + $0x368] sm:$0xff]  ;;  %v1471_v22 = vpack.c.bf16 %v211_v19, %v207_v18  ;;  %v215_v24 = vld [vmem:[%s2890_s2 + $0x380] sm:$0xff]  ;;  %v431_v18 = vld [vmem:[#allocation6 + $0x118] sm:$0xff] }
  0x60   :  { %1444 = vmatpush1.bf16.msra.mxu0 %v1443_v44  ;;  %v1469_v17 = vpack.c.bf16 %v212_v15, %v208_v14  ;;  %v216_v20 = vld [vmem:[%s2890_s2 + $0x388] sm:$0xff]  ;;  %v219_v25 = vld [vmem:[%s2890_s2 + $0x3a0] sm:$0xff]  ;;  %v402_v44 = vld [vmem:[#allocation6 + $0x30] sm:$0xff] }
  0x61   :  { %1446 = vmatprep.subr.bf16.mxu0 %v1445_v45  ;;  %v220_v21 = vld [vmem:[%s2890_s2 + $0x3a8] sm:$0xff]  ;;  %v1475_v28 = vpack.c.bf16 %v219_v25, %v215_v24  ;;  %v223_v30 = vld [vmem:[%s2890_s2 + $0x3c0] sm:$0xff]  ;;  %v435_v24 = vld [vmem:[#allocation6 + $0x138] sm:$0xff] }
  0x62   :  { %v1473_v23 = vpack.c.bf16 %v220_v21, %v216_v20  ;;  %v224_v26 = vld [vmem:[%s2890_s2 + $0x3c8] sm:$0xff]  ;;  %v227_v31 = vld [vmem:[%s2890_s2 + $0x3e0] sm:$0xff] }
  0x63   :  { %v228_v27 = vld [vmem:[%s2890_s2 + $0x3e8] sm:$0xff]  ;;  %v1479_v34 = vpack.c.bf16 %v227_v31, %v223_v30  ;;  %v396_v36 = vld [vmem:[#allocation6] sm:$0xff]  ;;  %v439_v30 = vld [vmem:[#allocation6 + $0x158] sm:$0xff] }
  0x64   :  { %1448 = vmatpush1.bf16.msra.mxu0 %v1447_v50  ;;  %v1477_v29 = vpack.c.bf16 %v228_v27, %v224_v26  ;;  %v397_v32 = vld [vmem:[#allocation6 + $0x8] sm:$0xff]  ;;  %v2323_v40 = vld [vmem:[%s2889_s1] sm:$0xff]  ;;  %v2325_v41 = vpack.c.bf16 %v398_v37, %v396_v36  ;;  %v406_v50 = vld [vmem:[#allocation6 + $0x50] sm:$0xff]  ;;  %s1257_s1 = sld [smem:[#allocation2 + $0x2]] }
  0x65   :  { %1450 = vmatprep.subr.bf16.mxu0 %v1449_v51  ;;  %v2318_v35 = vpack.c.bf16 %v399_v33, %v397_v32  ;;  %v401_v38 = vld [vmem:[#allocation6 + $0x28] sm:$0xff]  ;;  %v400_v43 = vld [vmem:[#allocation6 + $0x20] sm:$0xff]  ;;  %v443_v37 = vld [vmem:[#allocation6 + $0x178] sm:$0xff] }
  0x66   :  { %v2328_v42 = vpack.c.bf16 %v403_v39, %v401_v38  ;;  %v405_v45 = vld [vmem:[#allocation6 + $0x48] sm:$0xff]  ;;  %v2332_v47 = vpack.c.bf16 %v402_v44, %v400_v43  ;;  %v404_v49 = vld [vmem:[#allocation6 + $0x40] sm:$0xff]  ;;  %v442_v44 = vld [vmem:[#allocation6 + $0x170] sm:$0xff] }
  0x67   :  { %v2335_v48 = vpack.c.bf16 %v407_v46, %v405_v45  ;;  %v409_v51 = vld [vmem:[#allocation6 + $0x68] sm:$0xff]  ;;  %v2338_v53 = vpack.c.bf16 %v406_v50, %v404_v49  ;;  %v408_v55 = vld [vmem:[#allocation6 + $0x60] sm:$0xff]  ;;  %v447_v46 = vld [vmem:[#allocation6 + $0x198] sm:$0xff] }
  0x68   :  { %1452 = vmatpush1.bf16.msra.mxu0 %v1451_v56  ;;  %v2341_v54 = vpack.c.bf16 %v411_v52, %v409_v51  ;;  %v410_v56 = vld [vmem:[#allocation6 + $0x70] sm:$0xff]  ;;  %v412_v61 = vld [vmem:[#allocation6 + $0x80] sm:$0xff]  ;;  %v441_v36 = vld [vmem:[#allocation6 + $0x168] sm:$0xff] }
  0x69   :  { %1454 = vmatprep.subr.bf16.mxu0 %v1453_v57  ;;  %v413_v57 = vld [vmem:[#allocation6 + $0x88] sm:$0xff]  ;;  %v2344_v59 = vpack.c.bf16 %v410_v56, %v408_v55  ;;  %v416_v3 = vld [vmem:[#allocation6 + $0xa0] sm:$0xff]  ;;  %v2389_v39 = vpack.c.bf16 %v443_v37, %v441_v36  ;;  %v446_v52 = vld [vmem:[#allocation6 + $0x190] sm:$0xff] }
  0x6a   :  { %v2347_v60 = vpack.c.bf16 %v415_v58, %v413_v57  ;;  %v420_v9 = vld [vmem:[#allocation6 + $0xc0] sm:$0xff]  ;;  %v445_v45 = vld [vmem:[#allocation6 + $0x188] sm:$0xff]  ;;  %v451_v56 = vld [vmem:[#allocation6 + $0x1b8] sm:$0xff] }
  0x6b   :  { %v424_v15 = vld [vmem:[#allocation6 + $0xe0] sm:$0xff]  ;;  %v2395_v50 = vpack.c.bf16 %v447_v46, %v445_v45  ;;  %v449_v55 = vld [vmem:[#allocation6 + $0x1a8] sm:$0xff]  ;;  %v126_v36 = vld [vmem:[%s2890_s2 + $0xb8] sm:$0xff] }
  0x6c   :  { %1456 = vmatpush1.bf16.msra.mxu0 %v1455_v62  ;;  %v414_v62 = vld [vmem:[#allocation6 + $0x90] sm:$0xff]  ;;  %v428_v21 = vld [vmem:[#allocation6 + $0x100] sm:$0xff]  ;;  %v2401_v58 = vpack.c.bf16 %v451_v56, %v449_v55  ;;  %v130_v46 = vld [vmem:[%s2890_s2 + $0xd8] sm:$0xff] }
  0x6d   :  { %1458 = vmatprep.subr.bf16.mxu0 %v1457_v63  ;;  %v417_v63 = vld [vmem:[#allocation6 + $0xa8] sm:$0xff]  ;;  %v2350_v1 = vpack.c.bf16 %v414_v62, %v412_v61  ;;  %v432_v27 = vld [vmem:[#allocation6 + $0x120] sm:$0xff]  ;;  %v450_v62 = vld [vmem:[#allocation6 + $0x1b0] sm:$0xff] }
  0x6e   :  { %v2353_v2 = vpack.c.bf16 %v419_v0, %v417_v63  ;;  %v436_v33 = vld [vmem:[#allocation6 + $0x140] sm:$0xff]  ;;  %v453_v63 = vld [vmem:[#allocation6 + $0x1c8] sm:$0xff]  ;;  %v455_v0 = vld [vmem:[#allocation6 + $0x1d8] sm:$0xff] }
  0x6f   :  { %v440_v43 = vld [vmem:[#allocation6 + $0x160] sm:$0xff]  ;;  %v125_v45 = vld [vmem:[%s2890_s2 + $0xb0] sm:$0xff] }
  0x70   :  { %1460 = vmatpush1.bf16.msra.mxu0 %v1459_v4  ;;  %v418_v4 = vld [vmem:[#allocation6 + $0xb0] sm:$0xff]  ;;  %v2392_v49 = vpack.c.bf16 %v442_v44, %v440_v43  ;;  %v444_v51 = vld [vmem:[#allocation6 + $0x180] sm:$0xff] }
  0x71   :  { %1462 = vmatprep.subr.bf16.mxu0 %v1461_v5  ;;  %v421_v5 = vld [vmem:[#allocation6 + $0xc8] sm:$0xff]  ;;  %v2356_v7 = vpack.c.bf16 %v418_v4, %v416_v3  ;;  %v2398_v57 = vpack.c.bf16 %v446_v52, %v444_v51  ;;  %v448_v61 = vld [vmem:[#allocation6 + $0x1a0] sm:$0xff]  ;;  %v2407_v4 = vpack.c.bf16 %v455_v0, %v453_v63  ;;  %v121_v44 = vld [vmem:[%s2890_s2 + $0x90] sm:$0xff] }
  0x72   :  { %v2359_v8 = vpack.c.bf16 %v423_v6, %v421_v5  ;;  %v2404_v3 = vpack.c.bf16 %v450_v62, %v448_v61  ;;  %v452_v5 = vld [vmem:[#allocation6 + $0x1c0] sm:$0xff]  ;;  %v454_v6 = vld [vmem:[#allocation6 + $0x1d0] sm:$0xff]  ;;  %v134_v51 = vld [vmem:[%s2890_s2 + $0xf8] sm:$0xff]  ;;  %v1491_v52 = vpack.c.bf16 %v125_v45, %v121_v44 }
  0x73   :  { %v1493_v55 = vpack.c.bf16 %v134_v51, %v130_v46  ;;  %v129_v56 = vld [vmem:[%s2890_s2 + $0xd0] sm:$0xff]  ;;  %v138_v62 = vld [vmem:[%s2890_s2 + $0x118] sm:$0xff] }
  0x74   :  { %1464 = vmatpush1.bf16.msra.mxu0 %v1463_v10  ;;  %v422_v10 = vld [vmem:[#allocation6 + $0xd0] sm:$0xff]  ;;  %v142_v63 = vld [vmem:[%s2890_s2 + $0x138] sm:$0xff] }
  0x75   :  { %1466 = vmatprep.subr.bf16.mxu0 %v1465_v11  ;;  %v425_v11 = vld [vmem:[#allocation6 + $0xe8] sm:$0xff]  ;;  %v2362_v13 = vpack.c.bf16 %v422_v10, %v420_v9  ;;  %v2410_v9 = vpack.c.bf16 %v454_v6, %v452_v5  ;;  %v133_v61 = vld [vmem:[%s2890_s2 + $0xf0] sm:$0xff]  ;;  %v1497_v5 = vpack.c.bf16 %v142_v63, %v138_v62  ;;  %v170_v44 = vld [vmem:[%s2890_s2 + $0x218] sm:$0xff] }
  0x76   :  { %v2365_v14 = vpack.c.bf16 %v427_v12, %v425_v11  ;;  %v457_v10 = vld [vmem:[#allocation6 + $0x1e8] sm:$0xff]  ;;  %v459_v11 = vld [vmem:[#allocation6 + $0x1f8] sm:$0xff]  ;;  %v1495_v0 = vpack.c.bf16 %v133_v61, %v129_v56  ;;  %v137_v6 = vld [vmem:[%s2890_s2 + $0x110] sm:$0xff] }
  0x77   :  { %v2414_v12 = vpack.c.bf16 %v459_v11, %v457_v10  ;;  %v141_v10 = vld [vmem:[%s2890_s2 + $0x130] sm:$0xff]  ;;  %v146_v11 = vld [vmem:[%s2890_s2 + $0x158] sm:$0xff] }
  0x78   :  { %1468 = vmatpush1.bf16.msra.mxu0 %v1467_v16  ;;  %v426_v16 = vld [vmem:[#allocation6 + $0xf0] sm:$0xff]  ;;  %v174_v45 = vld [vmem:[%s2890_s2 + $0x238] sm:$0xff] }
  0x79   :  { %1470 = vmatprep.subr.bf16.mxu0 %v1469_v17  ;;  %v429_v17 = vld [vmem:[#allocation6 + $0x108] sm:$0xff]  ;;  %v2368_v19 = vpack.c.bf16 %v426_v16, %v424_v15  ;;  %v456_v15 = vld [vmem:[#allocation6 + $0x1e0] sm:$0xff]  ;;  %v458_v16 = vld [vmem:[#allocation6 + $0x1f0] sm:$0xff]  ;;  %v1513_v51 = vpack.c.bf16 %v174_v45, %v170_v44 }
  0x7a   :  { %v2371_v20 = vpack.c.bf16 %v431_v18, %v429_v17  ;;  %v2416_v17 = vpack.c.bf16 %v458_v16, %v456_v15  ;;  %v106_v18 = vld [vmem:[%s2890_s2 + $0x18] sm:$0xff]  ;;  %v1499_v16 = vpack.c.bf16 %v141_v10, %v137_v6 }
  0x7b   :  { %v150_v15 = vld [vmem:[%s2890_s2 + $0x178] sm:$0xff] }
  0x7c   :  { %1472 = vmatpush1.bf16.msra.mxu0 %v1471_v22  ;;  %v430_v22 = vld [vmem:[#allocation6 + $0x110] sm:$0xff]  ;;  %v178_v56 = vld [vmem:[%s2890_s2 + $0x258] sm:$0xff] }
  0x7d   :  { %1474 = vmatprep.subr.bf16.mxu0 %v1473_v23  ;;  %v433_v23 = vld [vmem:[#allocation6 + $0x128] sm:$0xff]  ;;  %v2374_v25 = vpack.c.bf16 %v430_v22, %v428_v21  ;;  %v110_v21 = vld [vmem:[%s2890_s2 + $0x38] sm:$0xff]  ;;  %v105_v22 = vld [vmem:[%s2890_s2 + $0x10] sm:$0xff] }
  0x7e   :  { %v2377_v26 = vpack.c.bf16 %v435_v24, %v433_v23  ;;  %v1481_v23 = vpack.c.bf16 %v110_v21, %v106_v18  ;;  %v109_v24 = vld [vmem:[%s2890_s2 + $0x30] sm:$0xff]  ;;  %v1501_v18 = vpack.c.bf16 %v150_v15, %v146_v11  ;;  %v182_v61 = vld [vmem:[%s2890_s2 + $0x278] sm:$0xff] }
  0x7f   :  { %v145_v21 = vld [vmem:[%s2890_s2 + $0x150] sm:$0xff]  ;;  %v1517_v63 = vpack.c.bf16 %v182_v61, %v178_v56  ;;  %v186_v6 = vld [vmem:[%s2890_s2 + $0x298] sm:$0xff] }
  0x80   :  { %1476 = vmatpush1.bf16.msra.mxu0 %v1475_v28  ;;  %v434_v28 = vld [vmem:[#allocation6 + $0x130] sm:$0xff]  ;;  %1482 = vmatprep.subr.bf16.mxu1 %v1481_v23  ;;  %v154_v23 = vld [vmem:[%s2890_s2 + $0x198] sm:$0xff] }
  0x81   :  { %1478 = vmatprep.subr.bf16.mxu0 %v1477_v29  ;;  %v437_v29 = vld [vmem:[#allocation6 + $0x148] sm:$0xff]  ;;  %v2380_v31 = vpack.c.bf16 %v434_v28, %v432_v27  ;;  %v118_v27 = vld [vmem:[%s2890_s2 + $0x78] sm:$0xff]  ;;  %v1483_v28 = vpack.c.bf16 %v109_v24, %v105_v22  ;;  %v149_v22 = vld [vmem:[%s2890_s2 + $0x170] sm:$0xff] }
  0x82   :  { %v2383_v32 = vpack.c.bf16 %v439_v30, %v437_v29  ;;  %v113_v30 = vld [vmem:[%s2890_s2 + $0x50] sm:$0xff]  ;;  %v158_v24 = vld [vmem:[%s2890_s2 + $0x1b8] sm:$0xff] }
  0x83   :  { %1484 = vmatpush1.bf16.msra.mxu1 %v1483_v28  ;;  %v153_v28 = vld [vmem:[%s2890_s2 + $0x190] sm:$0xff]  ;;  %v190_v10 = vld [vmem:[%s2890_s2 + $0x2b8] sm:$0xff] }
  0x84   :  { %1480 = vmatpush1.bf16.msra.mxu0 %v1479_v34  ;;  %v438_v34 = vld [vmem:[#allocation6 + $0x150] sm:$0xff]  ;;  %v1521_v15 = vpack.c.bf16 %v190_v10, %v186_v6 }
  0x85   :  { %1546 = vmatprep.subr.bf16.mxu0 %v2318_v35  ;;  %v2386_v38 = vpack.c.bf16 %v438_v34, %v436_v33  ;;  %v117_v33 = vld [vmem:[%s2890_s2 + $0x70] sm:$0xff]  ;;  %v122_v34 = vld [vmem:[%s2890_s2 + $0x98] sm:$0xff] }
  0x86   :  { %v1487_v37 = vpack.c.bf16 %v117_v33, %v113_v30  ;;  %v1489_v43 = vpack.c.bf16 %v126_v36, %v122_v34  ;;  %v162_v30 = vld [vmem:[%s2890_s2 + $0x1d8] sm:$0xff] }
  0x87   :  { %318 = vmatmul.mubr.f32.vlgmr.msra.gmra.mrb[0].mxu0 %v2323_v40  ;;  %v166_v33 = vld [vmem:[%s2890_s2 + $0x1f8] sm:$0xff] }
  0x88   :  { %1548 = vmatpush1.bf16.msra.mxu0 %v2325_v41  ;;  %v1509_v36 = vpack.c.bf16 %v166_v33, %v162_v30 }
  0x89   :  { %1550 = vmatprep.subr.bf16.mxu0 %v2328_v42 }
  0x8c   :  { %1552 = vmatpush1.bf16.msra.mxu0 %v2332_v47 }
  0x8d   :  { %1554 = vmatprep.subr.bf16.mxu0 %v2335_v48 }
  0x90   :  { %1556 = vmatpush1.bf16.msra.mxu0 %v2338_v53 }
  0x91   :  { %1558 = vmatprep.subr.bf16.mxu0 %v2341_v54 }
  0x94   :  { %1560 = vmatpush1.bf16.msra.mxu0 %v2344_v59 }
  0x95   :  { %1562 = vmatprep.subr.bf16.mxu0 %v2347_v60 }
  0x98   :  { %1564 = vmatpush1.bf16.msra.mxu0 %v2350_v1 }
  0x99   :  { %1566 = vmatprep.subr.bf16.mxu0 %v2353_v2 }
  0x9c   :  { %1568 = vmatpush1.bf16.msra.mxu0 %v2356_v7 }
  0x9d   :  { %1570 = vmatprep.subr.bf16.mxu0 %v2359_v8 }
  0xa0   :  { %1572 = vmatpush1.bf16.msra.mxu0 %v2362_v13 }
  0xa1   :  { %1574 = vmatprep.subr.bf16.mxu0 %v2365_v14 }
  0xa4   :  { %1576 = vmatpush1.bf16.msra.mxu0 %v2368_v19 }
  0xa5   :  { %1578 = vmatprep.subr.bf16.mxu0 %v2371_v20 }
  0xa8   :  { %1580 = vmatpush1.bf16.msra.mxu0 %v2374_v25 }
  0xa9   :  { %1582 = vmatprep.subr.bf16.mxu0 %v2377_v26 }
  0xac   :  { %1584 = vmatpush1.bf16.msra.mxu0 %v2380_v31 }
  0xad   :  { %1586 = vmatprep.subr.bf16.mxu0 %v2383_v32 }
  0xb0   :  { %1588 = vmatpush1.bf16.msra.mxu0 %v2386_v38 }
  0xb1   :  { %1590 = vmatprep.subr.bf16.mxu0 %v2389_v39 }
  0xb4   :  { %1592 = vmatpush1.bf16.msra.mxu0 %v2392_v49 }
  0xb5   :  { %1594 = vmatprep.subr.bf16.mxu0 %v2395_v50 }
  0xb8   :  { %1596 = vmatpush1.bf16.msra.mxu0 %v2398_v57 }
  0xb9   :  { %1598 = vmatprep.subr.bf16.mxu0 %v2401_v58 }
  0xbc   :  { %1600 = vmatpush1.bf16.msra.mxu0 %v2404_v3 }
  0xbd   :  { %1602 = vmatprep.subr.bf16.mxu0 %v2407_v4 }
  0xc0   :  { %1604 = vmatpush1.bf16.msra.mxu0 %v2410_v9 }
  0xc1   :  { %1606 = vmatprep.subr.bf16.mxu0 %v2414_v12 }
  0xc4   :  { %1608 = vmatpush1.bf16.msra.mxu0 %v2416_v17 }
  0xc5   :  { %1674 = vmatprep.subr.bf16.mxu0 %v2318_v35  ;;  %v114_v35 = vld [vmem:[%s2890_s2 + $0x58] sm:$0xff] }
  0xc6   :  { %v1485_v29 = vpack.c.bf16 %v118_v27, %v114_v35  ;;  %v1503_v35 = vpack.c.bf16 %v149_v22, %v145_v21  ;;  %v1505_v27 = vpack.c.bf16 %v158_v24, %v154_v23  ;;  %v194_v21 = vld [vmem:[%s2890_s2 + $0x2d8] sm:$0xff] }
  0xc7   :  { %v198_v22 = vld [vmem:[%s2890_s2 + $0x2f8] sm:$0xff] }
  0xc8   :  { %1486 = vmatprep.subr.bf16.mxu1 %v1485_v29  ;;  %v157_v29 = vld [vmem:[%s2890_s2 + $0x1b0] sm:$0xff]  ;;  %v1525_v24 = vpack.c.bf16 %v198_v22, %v194_v21 }
  0xc9   :  { %1488 = vmatpush1.bf16.msra.mxu1 %v1487_v37  ;;  %v1507_v34 = vpack.c.bf16 %v157_v29, %v153_v28  ;;  %v161_v37 = vld [vmem:[%s2890_s2 + $0x1d0] sm:$0xff]  ;;  %v202_v28 = vld [vmem:[%s2890_s2 + $0x318] sm:$0xff] }
  0xca   :  { %1490 = vmatprep.subr.bf16.mxu1 %v1489_v43  ;;  %v165_v43 = vld [vmem:[%s2890_s2 + $0x1f0] sm:$0xff]  ;;  %v206_v29 = vld [vmem:[%s2890_s2 + $0x338] sm:$0xff] }
  0xcb   :  { %v1511_v46 = vpack.c.bf16 %v165_v43, %v161_v37  ;;  %v1529_v33 = vpack.c.bf16 %v206_v29, %v202_v28  ;;  %v210_v37 = vld [vmem:[%s2890_s2 + $0x358] sm:$0xff] }
  0xcc   :  { %v214_v43 = vld [vmem:[%s2890_s2 + $0x378] sm:$0xff] }
  0xcd   :  { %1492 = vmatpush1.bf16.msra.mxu1 %v1491_v52  ;;  %v169_v52 = vld [vmem:[%s2890_s2 + $0x210] sm:$0xff]  ;;  %v1533_v45 = vpack.c.bf16 %v214_v43, %v210_v37 }
  0xce   :  { %1494 = vmatprep.subr.bf16.mxu1 %v1493_v55  ;;  %v173_v55 = vld [vmem:[%s2890_s2 + $0x230] sm:$0xff] }
  0xcf   :  { %v1515_v62 = vpack.c.bf16 %v173_v55, %v169_v52  ;;  %v218_v52 = vld [vmem:[%s2890_s2 + $0x398] sm:$0xff] }
  0xd0   :  { %v222_v55 = vld [vmem:[%s2890_s2 + $0x3b8] sm:$0xff] }
  0xd1   :  { %1496 = vmatpush1.bf16.msra.mxu1 %v1495_v0  ;;  %v177_v0 = vld [vmem:[%s2890_s2 + $0x250] sm:$0xff]  ;;  %v1537_v61 = vpack.c.bf16 %v222_v55, %v218_v52 }
  0xd2   :  { %1498 = vmatprep.subr.bf16.mxu1 %v1497_v5  ;;  %v181_v5 = vld [vmem:[%s2890_s2 + $0x270] sm:$0xff] }
  0xd3   :  { %v1519_v11 = vpack.c.bf16 %v181_v5, %v177_v0  ;;  %v226_v0 = vld [vmem:[%s2890_s2 + $0x3d8] sm:$0xff] }
  0xd4   :  { %v230_v5 = vld [vmem:[%s2890_s2 + $0x3f8] sm:$0xff] }
  0xd5   :  { %1500 = vmatpush1.bf16.msra.mxu1 %v1499_v16  ;;  %v185_v16 = vld [vmem:[%s2890_s2 + $0x290] sm:$0xff]  ;;  %v1541_v10 = vpack.c.bf16 %v230_v5, %v226_v0  ;;  %v576_v5 = vld [vmem:[#allocation5 + $0x80] sm:$0xff] }
  0xd6   :  { %1502 = vmatprep.subr.bf16.mxu1 %v1501_v18  ;;  %v189_v18 = vld [vmem:[%s2890_s2 + $0x2b0] sm:$0xff] }
  0xd7   :  { %v1523_v23 = vpack.c.bf16 %v189_v18, %v185_v16  ;;  %v561_v16 = vld [vmem:[#allocation5 + $0x8] sm:$0xff]  ;;  %v563_v18 = vld [vmem:[#allocation5 + $0x18] sm:$0xff] }
  0xd8   :  { %v1609_v22 = vpack.c.bf16 %v563_v18, %v561_v16  ;;  %v580_v18 = vld [vmem:[#allocation5 + $0xa0] sm:$0xff] }
  0xd9   :  { %1504 = vmatpush1.bf16.msra.mxu1 %v1503_v35  ;;  %v193_v35 = vld [vmem:[%s2890_s2 + $0x2d0] sm:$0xff] }
  0xda   :  { %1506 = vmatprep.subr.bf16.mxu1 %v1505_v27  ;;  %v197_v27 = vld [vmem:[%s2890_s2 + $0x2f0] sm:$0xff] }
  0xdb   :  { %v1527_v30 = vpack.c.bf16 %v197_v27, %v193_v35  ;;  %v565_v35 = vld [vmem:[#allocation5 + $0x28] sm:$0xff]  ;;  %v567_v27 = vld [vmem:[#allocation5 + $0x38] sm:$0xff] }
  0xdc   :  { %v1613_v29 = vpack.c.bf16 %v567_v27, %v565_v35  ;;  %v584_v27 = vld [vmem:[#allocation5 + $0xc0] sm:$0xff] }
  0xdd   :  { %1508 = vmatpush1.bf16.msra.mxu1 %v1507_v34  ;;  %v201_v34 = vld [vmem:[%s2890_s2 + $0x310] sm:$0xff] }
  0xde   :  { %1510 = vmatprep.subr.bf16.mxu1 %v1509_v36  ;;  %v205_v36 = vld [vmem:[%s2890_s2 + $0x330] sm:$0xff] }
  0xdf   :  { %v1531_v44 = vpack.c.bf16 %v205_v36, %v201_v34  ;;  %v569_v34 = vld [vmem:[#allocation5 + $0x48] sm:$0xff]  ;;  %v571_v36 = vld [vmem:[#allocation5 + $0x58] sm:$0xff] }
  0xe0   :  { %v1617_v43 = vpack.c.bf16 %v571_v36, %v569_v34  ;;  %v588_v36 = vld [vmem:[#allocation5 + $0xe0] sm:$0xff] }
  0xe1   :  { %1512 = vmatpush1.bf16.msra.mxu1 %v1511_v46  ;;  %v209_v46 = vld [vmem:[%s2890_s2 + $0x350] sm:$0xff] }
  0xe2   :  { %1514 = vmatprep.subr.bf16.mxu1 %v1513_v51  ;;  %v213_v51 = vld [vmem:[%s2890_s2 + $0x370] sm:$0xff] }
  0xe3   :  { %v1535_v56 = vpack.c.bf16 %v213_v51, %v209_v46  ;;  %v573_v46 = vld [vmem:[#allocation5 + $0x68] sm:$0xff]  ;;  %v575_v51 = vld [vmem:[#allocation5 + $0x78] sm:$0xff] }
  0xe4   :  { %v1621_v55 = vpack.c.bf16 %v575_v51, %v573_v46  ;;  %v592_v51 = vld [vmem:[#allocation5 + $0x100] sm:$0xff] }
  0xe5   :  { %1516 = vmatpush1.bf16.msra.mxu1 %v1515_v62  ;;  %v217_v62 = vld [vmem:[%s2890_s2 + $0x390] sm:$0xff] }
  0xe6   :  { %1518 = vmatprep.subr.bf16.mxu1 %v1517_v63  ;;  %v221_v63 = vld [vmem:[%s2890_s2 + $0x3b0] sm:$0xff] }
  0xe7   :  { %v1539_v6 = vpack.c.bf16 %v221_v63, %v217_v62  ;;  %v577_v62 = vld [vmem:[#allocation5 + $0x88] sm:$0xff]  ;;  %v579_v63 = vld [vmem:[#allocation5 + $0x98] sm:$0xff] }
  0xe9   :  { %1520 = vmatpush1.bf16.msra.mxu1 %v1519_v11  ;;  %v225_v11 = vld [vmem:[%s2890_s2 + $0x3d0] sm:$0xff] }
  0xea   :  { %1522 = vmatprep.subr.bf16.mxu1 %v1521_v15  ;;  %v229_v15 = vld [vmem:[%s2890_s2 + $0x3f0] sm:$0xff] }
  0xeb   :  { %v1543_v21 = vpack.c.bf16 %v229_v15, %v225_v11  ;;  %v583_v11 = vld [vmem:[#allocation5 + $0xb8] sm:$0xff] }
  0xed   :  { %1524 = vmatpush1.bf16.msra.mxu1 %v1523_v23  ;;  %v560_v23 = vld [vmem:[#allocation5] sm:$0xff] }
  0xee   :  { %1526 = vmatprep.subr.bf16.mxu1 %v1525_v24  ;;  %v562_v24 = vld [vmem:[#allocation5 + $0x10] sm:$0xff] }
  0xef   :  { %v1611_v28 = vpack.c.bf16 %v562_v24, %v560_v23  ;;  %v587_v23 = vld [vmem:[#allocation5 + $0xd8] sm:$0xff] }
  0xf1   :  { %1528 = vmatpush1.bf16.msra.mxu1 %v1527_v30  ;;  %v564_v30 = vld [vmem:[#allocation5 + $0x20] sm:$0xff] }
  0xf2   :  { %1530 = vmatprep.subr.bf16.mxu1 %v1529_v33  ;;  %v566_v33 = vld [vmem:[#allocation5 + $0x30] sm:$0xff] }
  0xf3   :  { %v1615_v37 = vpack.c.bf16 %v566_v33, %v564_v30  ;;  %v591_v30 = vld [vmem:[#allocation5 + $0xf8] sm:$0xff] }
  0xf5   :  { %1532 = vmatpush1.bf16.msra.mxu1 %v1531_v44  ;;  %v568_v44 = vld [vmem:[#allocation5 + $0x40] sm:$0xff] }
  0xf6   :  { %1534 = vmatprep.subr.bf16.mxu1 %v1533_v45  ;;  %v570_v45 = vld [vmem:[#allocation5 + $0x50] sm:$0xff] }
  0xf7   :  { %v1619_v52 = vpack.c.bf16 %v570_v45, %v568_v44  ;;  %v595_v44 = vld [vmem:[#allocation5 + $0x118] sm:$0xff] }
  0xf9   :  { %1536 = vmatpush1.bf16.msra.mxu1 %v1535_v56  ;;  %v572_v56 = vld [vmem:[#allocation5 + $0x60] sm:$0xff] }
  0xfa   :  { %1538 = vmatprep.subr.bf16.mxu1 %v1537_v61  ;;  %v574_v61 = vld [vmem:[#allocation5 + $0x70] sm:$0xff] }
  0xfb   :  { %v1623_v0 = vpack.c.bf16 %v574_v61, %v572_v56  ;;  %v233_v56 = vlaneseq }
  0xfd   :  { %1540 = vmatpush1.bf16.msra.mxu1 %v1539_v6  ;;  %v578_v6 = vld [vmem:[#allocation5 + $0x90] sm:$0xff]  ;;  %v2614_v61 = vshrl.u32 %v233_v56, 7 }
  0xfe   :  { %1542 = vmatprep.subr.bf16.mxu1 %v1541_v10  ;;  %v581_v10 = vld [vmem:[#allocation5 + $0xa8] sm:$0xff]  ;;  %v1627_v15 = vpack.c.bf16 %v578_v6, %v576_v5 }
  0xff   :  { %v1629_v16 = vpack.c.bf16 %v583_v11, %v581_v10 }
 0x101   :  { %1544 = vmatpush1.bf16.msra.mxu1 %v1543_v21  ;;  %v582_v21 = vld [vmem:[#allocation5 + $0xb0] sm:$0xff] }
 0x102   :  { %1610 = vmatprep.subr.bf16.mxu1 %v1609_v22  ;;  %v585_v22 = vld [vmem:[#allocation5 + $0xc8] sm:$0xff]  ;;  %v1631_v24 = vpack.c.bf16 %v582_v21, %v580_v18 }
 0x103   :  { %v1633_v35 = vpack.c.bf16 %v587_v23, %v585_v22  ;;  %v616_v23 = vld [vmem:[#allocation5 + $0x1c0] sm:$0xff] }
 0x104   :  { %389 = vmatmul.mubr.f32.vlgmr.msra.gmra.mrb[0].mxu1 %v2323_v40  ;;  %v1625_v40 = vpack.c.bf16 %v579_v63, %v577_v62  ;;  %v2617_v62 = vsub.s32 1, %v2614_v61  ;;  %v2622_v63 = vld [vmem:[%s2891_s3] sm:$0xf]  ;;  %s395_s3 = sld [smem:[#allocation2]] }
 0x105   :  { %1612 = vmatpush1.bf16.msra.mxu1 %v1611_v28  ;;  %v586_v28 = vld [vmem:[#allocation5 + $0xd0] sm:$0xff] }
 0x106   :  { %1614 = vmatprep.subr.bf16.mxu1 %v1613_v29  ;;  %v589_v29 = vld [vmem:[#allocation5 + $0xe8] sm:$0xff]  ;;  %v1635_v33 = vpack.c.bf16 %v586_v28, %v584_v27  ;;  %v623_v27 = vld [vmem:[#allocation5 + $0x1f8] sm:$0xff] }
 0x107   :  { %v1637_v34 = vpack.c.bf16 %v591_v30, %v589_v29  ;;  %v620_v30 = vld [vmem:[#allocation5 + $0x1e0] sm:$0xff] }
 0x109   :  { %1616 = vmatpush1.bf16.msra.mxu1 %v1615_v37  ;;  %v590_v37 = vld [vmem:[#allocation5 + $0xf0] sm:$0xff] }
 0x10a   :  { %1618 = vmatprep.subr.bf16.mxu1 %v1617_v43  ;;  %v593_v43 = vld [vmem:[#allocation5 + $0x108] sm:$0xff]  ;;  %v1639_v45 = vpack.c.bf16 %v590_v37, %v588_v36 }
 0x10b   :  { %v1641_v46 = vpack.c.bf16 %v595_v44, %v593_v43 }
 0x10d   :  { %1620 = vmatpush1.bf16.msra.mxu1 %v1619_v52  ;;  %v594_v52 = vld [vmem:[#allocation5 + $0x110] sm:$0xff] }
 0x10e   :  { %1622 = vmatprep.subr.bf16.mxu1 %v1621_v55  ;;  %v1643_v55 = vpack.c.bf16 %v594_v52, %v592_v51 }
 0x111   :  { %1624 = vmatpush1.bf16.msra.mxu1 %v1623_v0  ;;  %v2625_v0 = vsub.s32 0, %v2614_v61 }
 0x112   :  { %1626 = vmatprep.subr.bf16.mxu1 %v1625_v40  ;;  %v240_v40 = vrot.slane %v2622_v63, %v2617_v62 }
 0x113   :  { %v236_v5 = vrot.slane %v2622_v63, %v2625_v0 }
 0x115   :  { %1628 = vmatpush1.bf16.msra.mxu1 %v1627_v15 }
 0x116   :  { %1630 = vmatprep.subr.bf16.mxu1 %v1629_v16 }
 0x119   :  { %1632 = vmatpush1.bf16.msra.mxu1 %v1631_v24  ;;  %v618_v24 = vld [vmem:[#allocation5 + $0x1d0] sm:$0xff] }
 0x11a   :  { %1634 = vmatprep.subr.bf16.mxu1 %v1633_v35  ;;  %v621_v35 = vld [vmem:[#allocation5 + $0x1e8] sm:$0xff]  ;;  %v1667_v28 = vpack.c.bf16 %v618_v24, %v616_v23  ;;  %v826_v24 = vld [vmem:[#allocation8 + $0x80] sm:$0xff] }
 0x11b   :  { %v1669_v29 = vpack.c.bf16 %v623_v27, %v621_v35  ;;  %v828_v35 = vld [vmem:[#allocation8 + $0x90] sm:$0xff]  ;;  %v831_v27 = vld [vmem:[#allocation8 + $0xa8] sm:$0xff] }
 0x11d   :  { %1636 = vmatpush1.bf16.msra.mxu1 %v1635_v33  ;;  %v622_v33 = vld [vmem:[#allocation5 + $0x1f0] sm:$0xff] }
 0x11e   :  { %1638 = vmatprep.subr.bf16.mxu1 %v1637_v34  ;;  %v1671_v34 = vpack.c.bf16 %v622_v33, %v620_v30  ;;  %v830_v33 = vld [vmem:[#allocation8 + $0xa0] sm:$0xff] }
 0x121   :  { %1640 = vmatpush1.bf16.msra.mxu1 %v1639_v45 }
 0x122   :  { %1642 = vmatprep.subr.bf16.mxu1 %v1641_v46 }
 0x125   :  { %1644 = vmatpush1.bf16.msra.mxu1 %v1643_v55 }
 0x15a   :  { %v319_v6 = vpop.f32.mrb[0].mxu0 }
 0x15b   :  { %v321_v10 = vpop.f32.mrb[1].mxu0  ;;  %v2633_v15 = vadd.f32 %v319_v6, %v236_v5 }
 0x15c   :  { %v2631_v11 = vadd.f32 %v321_v10, %v240_v40 }
 0x15d   :  { %v460_v18 = vmul.f32 %v2633_v15, %v2633_v15 }
 0x15e   :  { %526 = vmatprep.mubr.f32.mxu0 %v2631_v11  ;;  %v461_v16 = vmul.f32 %v2631_v11, %v2631_v11 }
 0x15f   :  { %527 = vmatmul.mubr.f32.vlgmr.msra.gmra.mrb[2].mxu0 %v2633_v15 }
 0x160   :  { %532 = vmatprep.mubr.f32.mxu0 %v461_v16  ;;  %1676 = vmatpush1.bf16.msra.mxu0 %v2325_v41  ;;  %v597_v41 = vld [vmem:[#allocation5 + $0x128] sm:$0xff] }
 0x161   :  { %1678 = vmatprep.subr.bf16.mxu0 %v2328_v42  ;;  %v599_v42 = vld [vmem:[#allocation5 + $0x138] sm:$0xff] }
 0x163   :  { %533 = vmatmul.mubr.f32.gmra.mrb[4].mxu0 %v460_v18 }
 0x164   :  { %1680 = vmatpush1.bf16.msra.mxu0 %v2332_v47  ;;  %v1645_v47 = vpack.c.bf16 %v599_v42, %v597_v41  ;;  %v555_v42 = vstv %s395_s3 }
 0x165   :  { %1682 = vmatprep.subr.bf16.mxu0 %v2335_v48  ;;  %v596_v48 = vld [vmem:[#allocation5 + $0x120] sm:$0xff] }
 0x166   :  { %1646 = vmatprep.subr.bf16.mxu1 %v1645_v47 }
 0x168   :  { %1684 = vmatpush1.bf16.msra.mxu0 %v2338_v53  ;;  %v598_v53 = vld [vmem:[#allocation5 + $0x130] sm:$0xff] }
 0x169   :  { %1686 = vmatprep.subr.bf16.mxu0 %v2341_v54  ;;  %v1647_v54 = vpack.c.bf16 %v598_v53, %v596_v48 }
 0x16b   :  { %1648 = vmatpush1.bf16.msra.mxu1 %v1647_v54 }
 0x16c   :  { %1688 = vmatpush1.bf16.msra.mxu0 %v2344_v59  ;;  %v601_v59 = vld [vmem:[#allocation5 + $0x148] sm:$0xff] }
 0x16d   :  { %1690 = vmatprep.subr.bf16.mxu0 %v2347_v60  ;;  %v603_v60 = vld [vmem:[#allocation5 + $0x158] sm:$0xff] }
 0x170   :  { %1692 = vmatpush1.bf16.msra.mxu0 %v2350_v1  ;;  %v1649_v1 = vpack.c.bf16 %v603_v60, %v601_v59 }
 0x171   :  { %1694 = vmatprep.subr.bf16.mxu0 %v2353_v2  ;;  %v600_v2 = vld [vmem:[#allocation5 + $0x140] sm:$0xff] }
 0x172   :  { %1650 = vmatprep.subr.bf16.mxu1 %v1649_v1 }
 0x174   :  { %1696 = vmatpush1.bf16.msra.mxu0 %v2356_v7  ;;  %v602_v7 = vld [vmem:[#allocation5 + $0x150] sm:$0xff] }
 0x175   :  { %1698 = vmatprep.subr.bf16.mxu0 %v2359_v8  ;;  %v1651_v8 = vpack.c.bf16 %v602_v7, %v600_v2  ;;  %v811_v2 = vld [vmem:[#allocation8 + $0x8] sm:$0xff]  ;;  %v813_v7 = vld [vmem:[#allocation8 + $0x18] sm:$0xff] }
 0x177   :  { %1652 = vmatpush1.bf16.msra.mxu1 %v1651_v8  ;;  %v810_v8 = vld [vmem:[#allocation8] sm:$0xff] }
 0x178   :  { %1700 = vmatpush1.bf16.msra.mxu0 %v2362_v13  ;;  %v605_v13 = vld [vmem:[#allocation5 + $0x168] sm:$0xff] }
 0x179   :  { %1702 = vmatprep.subr.bf16.mxu0 %v2365_v14  ;;  %v607_v14 = vld [vmem:[#allocation5 + $0x178] sm:$0xff] }
 0x17c   :  { %1704 = vmatpush1.bf16.msra.mxu0 %v2368_v19  ;;  %v1653_v19 = vpack.c.bf16 %v607_v14, %v605_v13  ;;  %v1737_v13 = vpack.c.bf16 %v813_v7, %v811_v2  ;;  %v815_v14 = vld [vmem:[#allocation8 + $0x28] sm:$0xff] }
 0x17d   :  { %1706 = vmatprep.subr.bf16.mxu0 %v2371_v20  ;;  %v604_v20 = vld [vmem:[#allocation5 + $0x160] sm:$0xff] }
 0x17e   :  { %1654 = vmatprep.subr.bf16.mxu1 %v1653_v19  ;;  %v817_v19 = vld [vmem:[#allocation8 + $0x38] sm:$0xff] }
 0x180   :  { %1708 = vmatpush1.bf16.msra.mxu0 %v2374_v25  ;;  %v606_v25 = vld [vmem:[#allocation5 + $0x170] sm:$0xff] }
 0x181   :  { %1710 = vmatprep.subr.bf16.mxu0 %v2377_v26  ;;  %v1655_v26 = vpack.c.bf16 %v606_v25, %v604_v20  ;;  %v1741_v20 = vpack.c.bf16 %v817_v19, %v815_v14  ;;  %v814_v25 = vld [vmem:[#allocation8 + $0x20] sm:$0xff]  ;;  %v847_v14 = vld [vmem:[#allocation8 + $0x128] sm:$0xff]  ;;  %v849_v19 = vld [vmem:[#allocation8 + $0x138] sm:$0xff] }
 0x183   :  { %1656 = vmatpush1.bf16.msra.mxu1 %v1655_v26  ;;  %v816_v26 = vld [vmem:[#allocation8 + $0x30] sm:$0xff] }
 0x184   :  { %1712 = vmatpush1.bf16.msra.mxu0 %v2380_v31  ;;  %v609_v31 = vld [vmem:[#allocation5 + $0x188] sm:$0xff] }
 0x185   :  { %1714 = vmatprep.subr.bf16.mxu0 %v2383_v32  ;;  %v611_v32 = vld [vmem:[#allocation5 + $0x198] sm:$0xff] }
 0x188   :  { %1716 = vmatpush1.bf16.msra.mxu0 %v2386_v38  ;;  %v1657_v38 = vpack.c.bf16 %v611_v32, %v609_v31  ;;  %v819_v31 = vld [vmem:[#allocation8 + $0x48] sm:$0xff]  ;;  %v821_v32 = vld [vmem:[#allocation8 + $0x58] sm:$0xff] }
 0x189   :  { %1718 = vmatprep.subr.bf16.mxu0 %v2389_v39  ;;  %v608_v39 = vld [vmem:[#allocation5 + $0x180] sm:$0xff] }
 0x18a   :  { %1658 = vmatprep.subr.bf16.mxu1 %v1657_v38  ;;  %v1743_v38 = vpack.c.bf16 %v816_v26, %v814_v25  ;;  %v848_v25 = vld [vmem:[#allocation8 + $0x130] sm:$0xff] }
 0x18c   :  { %1720 = vmatpush1.bf16.msra.mxu0 %v2392_v49  ;;  %v610_v49 = vld [vmem:[#allocation5 + $0x190] sm:$0xff] }
 0x18d   :  { %1722 = vmatprep.subr.bf16.mxu0 %v2395_v50  ;;  %v1659_v50 = vpack.c.bf16 %v610_v49, %v608_v39  ;;  %v1745_v39 = vpack.c.bf16 %v821_v32, %v819_v31  ;;  %v818_v49 = vld [vmem:[#allocation8 + $0x40] sm:$0xff]  ;;  %v851_v31 = vld [vmem:[#allocation8 + $0x148] sm:$0xff]  ;;  %v853_v32 = vld [vmem:[#allocation8 + $0x158] sm:$0xff] }
 0x18f   :  { %1660 = vmatpush1.bf16.msra.mxu1 %v1659_v50  ;;  %v820_v50 = vld [vmem:[#allocation8 + $0x50] sm:$0xff] }
 0x190   :  { %1724 = vmatpush1.bf16.msra.mxu0 %v2398_v57  ;;  %v613_v57 = vld [vmem:[#allocation5 + $0x1a8] sm:$0xff] }
 0x191   :  { %1726 = vmatprep.subr.bf16.mxu0 %v2401_v58  ;;  %v615_v58 = vld [vmem:[#allocation5 + $0x1b8] sm:$0xff] }
 0x194   :  { %1728 = vmatpush1.bf16.msra.mxu0 %v2404_v3  ;;  %v612_v3 = vld [vmem:[#allocation5 + $0x1a0] sm:$0xff] }
 0x195   :  { %1730 = vmatprep.subr.bf16.mxu0 %v2407_v4  ;;  %v1661_v4 = vpack.c.bf16 %v615_v58, %v613_v57  ;;  %v823_v57 = vld [vmem:[#allocation8 + $0x68] sm:$0xff]  ;;  %v825_v58 = vld [vmem:[#allocation8 + $0x78] sm:$0xff] }
 0x197   :  { %1662 = vmatprep.subr.bf16.mxu1 %v1661_v4  ;;  %v1749_v4 = vpack.c.bf16 %v825_v58, %v823_v57  ;;  %v855_v57 = vld [vmem:[#allocation8 + $0x168] sm:$0xff]  ;;  %v857_v58 = vld [vmem:[#allocation8 + $0x178] sm:$0xff] }
 0x198   :  { %1732 = vmatpush1.bf16.msra.mxu0 %v2410_v9  ;;  %v614_v9 = vld [vmem:[#allocation5 + $0x1b0] sm:$0xff] }
 0x199   :  { %1734 = vmatprep.subr.bf16.mxu0 %v2414_v12  ;;  %v617_v12 = vld [vmem:[#allocation5 + $0x1c8] sm:$0xff]  ;;  %v1663_v21 = vpack.c.bf16 %v614_v9, %v612_v3  ;;  %v1747_v3 = vpack.c.bf16 %v820_v50, %v818_v49  ;;  %v822_v9 = vld [vmem:[#allocation8 + $0x60] sm:$0xff]  ;;  %v852_v49 = vld [vmem:[#allocation8 + $0x150] sm:$0xff] }
 0x19b   :  { %1664 = vmatpush1.bf16.msra.mxu1 %v1663_v21  ;;  %v829_v21 = vld [vmem:[#allocation8 + $0x98] sm:$0xff] }
 0x19c   :  { %1736 = vmatpush1.bf16.msra.mxu0 %v2416_v17  ;;  %v619_v17 = vld [vmem:[#allocation5 + $0x1d8] sm:$0xff] }
 0x19d   :  { %v1665_v22 = vpack.c.bf16 %v619_v17, %v617_v12  ;;  %v824_v12 = vld [vmem:[#allocation8 + $0x70] sm:$0xff]  ;;  %v827_v17 = vld [vmem:[#allocation8 + $0x88] sm:$0xff] }
 0x19e   :  { %v1753_v23 = vpack.c.bf16 %v829_v21, %v827_v17  ;;  %v859_v17 = vld [vmem:[#allocation8 + $0x188] sm:$0xff]  ;;  %v861_v21 = vld [vmem:[#allocation8 + $0x198] sm:$0xff] }
 0x19f   :  { %1666 = vmatprep.subr.bf16.mxu1 %v1665_v22  ;;  %v1751_v22 = vpack.c.bf16 %v824_v12, %v822_v9  ;;  %v856_v9 = vld [vmem:[#allocation8 + $0x170] sm:$0xff] }
 0x1a0   :  { %1668 = vmatpush1.bf16.msra.mxu1 %v1667_v28  ;;  %v833_v28 = vld [vmem:[#allocation8 + $0xb8] sm:$0xff] }
 0x1a1   :  { %1670 = vmatprep.subr.bf16.mxu1 %v1669_v29  ;;  %v1755_v29 = vpack.c.bf16 %v828_v35, %v826_v24  ;;  %v1757_v30 = vpack.c.bf16 %v833_v28, %v831_v27  ;;  %v860_v24 = vld [vmem:[#allocation8 + $0x190] sm:$0xff]  ;;  %v863_v27 = vld [vmem:[#allocation8 + $0x1a8] sm:$0xff]  ;;  %v865_v28 = vld [vmem:[#allocation8 + $0x1b8] sm:$0xff] }
 0x1a4   :  { %1672 = vmatpush1.bf16.msra.mxu1 %v1671_v34  ;;  %v832_v34 = vld [vmem:[#allocation8 + $0xb0] sm:$0xff] }
 0x1a5   :  { %1738 = vmatprep.subr.bf16.mxu1 %v1737_v13  ;;  %v844_v13 = vld [vmem:[#allocation8 + $0x110] sm:$0xff] }
 0x1d7   :  { %v2672_v36 = vpop.f32.mrb[0].mxu1 }
 0x1d8   :  { %v2674_v37 = vpop.f32.mrb[1].mxu1 }
 0x232   :  { %v528_v43 = vpop.f32.mrb[2].mxu0 }
 0x233   :  { %v530_v44 = vpop.f32.mrb[3].mxu0  ;;  %v539_v45 = vmul.f32 %v528_v43, %v528_v43  ;;  %v545_v16 = vsub.f32 %v2633_v15, %v528_v43  ;;  %v812_v15 = vld [vmem:[#allocation8 + $0x10] sm:$0xff]  ;;  %v835_v43 = vld [vmem:[#allocation8 + $0xc8] sm:$0xff] }
 0x234   :  { %v540_v46 = vmul.f32 %v530_v44, %v530_v44  ;;  %v546_v41 = vsub.f32 %v2631_v11, %v530_v44  ;;  %v1739_v11 = vpack.c.bf16 %v812_v15, %v810_v8  ;;  %v837_v44 = vld [vmem:[#allocation8 + $0xd8] sm:$0xff]  ;;  %v842_v8 = vld [vmem:[#allocation8 + $0x100] sm:$0xff] }
 0x235   :  { %v1771_v15 = vpack.c.bf16 %v844_v13, %v842_v8  ;;  %v966_v13 = vld [vmem:[%s2899_s11 + $0x40] sm:$0xff] }
 0x236   :  { %v534_v51 = vpop.f32.mrb[4].mxu0 }
 0x237   :  { %v541_v52 = vsub.f32 %v534_v51, %v539_v45  ;;  %v536_v55 = vpop.f32.mrb[5].mxu0  ;;  %v1759_v45 = vpack.c.bf16 %v832_v34, %v830_v33  ;;  %v834_v51 = vld [vmem:[#allocation8 + $0xc0] sm:$0xff]  ;;  %v864_v33 = vld [vmem:[#allocation8 + $0x1b0] sm:$0xff] }
 0x238   :  { %v542_v56 = vsub.f32 %v536_v55, %v540_v46  ;;  %v1761_v46 = vpack.c.bf16 %v837_v44, %v835_v43  ;;  %v839_v55 = vld [vmem:[#allocation8 + $0xe8] sm:$0xff]  ;;  %v869_v44 = vld [vmem:[#allocation8 + $0x1d8] sm:$0xff] }
 0x239   :  { %v543_v40 = vmax.f32 %v541_v52, 0.0  ;;  %v836_v52 = vld [vmem:[#allocation8 + $0xd0] sm:$0xff]  ;;  %v867_v43 = vld [vmem:[#allocation8 + $0x1c8] sm:$0xff] }
 0x23a   :  { %v544_v5 = vmax.f32 %v542_v56, 0.0  ;;  %v841_v56 = vld [vmem:[#allocation8 + $0xf8] sm:$0xff] }
 0x23b   :  { %v547_v6 = vadd.f32 1e-05, %v543_v40  ;;  %v1763_v40 = vpack.c.bf16 %v836_v52, %v834_v51  ;;  %v868_v51 = vld [vmem:[#allocation8 + $0x1d0] sm:$0xff] }
 0x23c   :  { %v548_v10 = vadd.f32 1e-05, %v544_v5  ;;  %v1765_v5 = vpack.c.bf16 %v841_v56, %v839_v55  ;;  %v871_v55 = vld [vmem:[#allocation8 + $0x1e8] sm:$0xff]  ;;  %v873_v56 = vld [vmem:[#allocation8 + $0x1f8] sm:$0xff] }
 0x23d   :  { %1890 = vrsqrt.f32 %v547_v6  ;;  %v838_v6 = vld [vmem:[#allocation8 + $0xe0] sm:$0xff] }
 0x23e   :  { %1892 = vrsqrt.f32 %v548_v10  ;;  %v840_v10 = vld [vmem:[#allocation8 + $0xf0] sm:$0xff] }
 0x247   :  { %v1891_v18 = vpop.eup %1890 }
 0x248   :  { %v1893_v47 = vpop.eup %1892  ;;  %v551_v48 = vmul.f32 %v1891_v18, %v545_v16  ;;  %v843_v16 = vld [vmem:[#allocation8 + $0x108] sm:$0xff]  ;;  %v845_v18 = vld [vmem:[#allocation8 + $0x118] sm:$0xff] }
 0x249   :  { %v552_v53 = vmul.f32 %v1893_v47, %v546_v41  ;;  %v1767_v41 = vpack.c.bf16 %v840_v10, %v838_v6  ;;  %v624_v47 = vld [vmem:[%s2893_s5] sm:$0x3]  ;;  %v872_v6 = vld [vmem:[#allocation8 + $0x1f0] sm:$0xff] }
 0x24a   :  { %v556_v54 = vmul.f32 %v555_v42, %v551_v48  ;;  %vm553_vm1 = vcmp.ge.f32.partialorder %v551_v48, 0.0 }
 0x24b   :  { %vm554_vm0 = vcmp.ge.f32.partialorder %v552_v53, 0.0  ;;  %v557_v59 = vmul.f32 %v555_v42, %v552_v53  ;;  %v1769_v42 = vpack.c.bf16 %v845_v18, %v843_v16  ;;  %v958_v16 = vld [vmem:[%s2899_s11] sm:$0xff]  ;;  %v959_v18 = vld [vmem:[%s2899_s11 + $0x8] sm:$0xff] }
 0x24c   :  { %v558_v1 = vsel %vm553_vm1, %v551_v48, %v556_v54  ;;  %v633_v48 = vrot.slane %v624_v47, %v2617_v62 }
 0x24d   :  { %v559_v60 = vsel %vm554_vm0, %v552_v53, %v557_v59  ;;  %v629_v53 = vrot.slane %v624_v47, %v2625_v0  ;;  %v961_v47 = vld [vmem:[%s2899_s11 + $0x18] sm:$0xff] }
 0x24e   :  { %700 = vmatprep.mubr.f32.mxu1 %v559_v60 }
 0x24f   :  { %701 = vmatmul.mubr.f32.vlgmr.msra.gmra.mrb[2].mxu1 %v558_v1 }
 0x250   :  { %1740 = vmatpush1.bf16.msra.mxu1 %v1739_v11  ;;  %v1773_v11 = vpack.c.bf16 %v849_v19, %v847_v14  ;;  %v968_v19 = vld [vmem:[%s2899_s11 + $0x50] sm:$0xff] }
 0x251   :  { %1742 = vmatprep.subr.bf16.mxu1 %v1741_v20  ;;  %v846_v20 = vld [vmem:[#allocation8 + $0x120] sm:$0xff] }
 0x252   :  { %v1775_v26 = vpack.c.bf16 %v848_v25, %v846_v20  ;;  %v970_v25 = vld [vmem:[%s2899_s11 + $0x60] sm:$0xff] }
 0x254   :  { %1744 = vmatpush1.bf16.msra.mxu1 %v1743_v38  ;;  %v1777_v38 = vpack.c.bf16 %v853_v32, %v851_v31 }
 0x255   :  { %1746 = vmatprep.subr.bf16.mxu1 %v1745_v39  ;;  %v850_v39 = vld [vmem:[#allocation8 + $0x140] sm:$0xff] }
 0x256   :  { %v1779_v50 = vpack.c.bf16 %v852_v49, %v850_v39 }
 0x258   :  { %1748 = vmatpush1.bf16.msra.mxu1 %v1747_v3  ;;  %v1781_v3 = vpack.c.bf16 %v857_v58, %v855_v57 }
 0x259   :  { %1750 = vmatprep.subr.bf16.mxu1 %v1749_v4  ;;  %v854_v4 = vld [vmem:[#allocation8 + $0x160] sm:$0xff] }
 0x25a   :  { %v1783_v12 = vpack.c.bf16 %v856_v9, %v854_v4 }
 0x25c   :  { %1752 = vmatpush1.bf16.msra.mxu1 %v1751_v22  ;;  %v1785_v22 = vpack.c.bf16 %v861_v21, %v859_v17  ;;  %v243_v21 = vsub.s32 2, %v2614_v61 }
 0x25d   :  { %1754 = vmatprep.subr.bf16.mxu1 %v1753_v23  ;;  %v858_v23 = vld [vmem:[#allocation8 + $0x180] sm:$0xff] }
 0x25e   :  { %v1787_v35 = vpack.c.bf16 %v860_v24, %v858_v23 }
 0x260   :  { %1756 = vmatpush1.bf16.msra.mxu1 %v1755_v29  ;;  %v1789_v29 = vpack.c.bf16 %v865_v28, %v863_v27  ;;  %v803_v28 = vstv %s1256_s18 }
 0x261   :  { %1758 = vmatprep.subr.bf16.mxu1 %v1757_v30  ;;  %v862_v30 = vld [vmem:[#allocation8 + $0x1a0] sm:$0xff] }
 0x262   :  { %v1791_v34 = vpack.c.bf16 %v864_v33, %v862_v30 }
 0x264   :  { %1760 = vmatpush1.bf16.msra.mxu1 %v1759_v45  ;;  %v1793_v45 = vpack.c.bf16 %v869_v44, %v867_v43 }
 0x265   :  { %1762 = vmatprep.subr.bf16.mxu1 %v1761_v46  ;;  %v866_v46 = vld [vmem:[#allocation8 + $0x1c0] sm:$0xff] }
 0x266   :  { %v1795_v52 = vpack.c.bf16 %v868_v51, %v866_v46 }
 0x268   :  { %1764 = vmatpush1.bf16.msra.mxu1 %v1763_v40  ;;  %v870_v40 = vld [vmem:[#allocation8 + $0x1e0] sm:$0xff] }
 0x269   :  { %1766 = vmatprep.subr.bf16.mxu1 %v1765_v5  ;;  %v1797_v5 = vpack.c.bf16 %v873_v56, %v871_v55  ;;  %v1799_v10 = vpack.c.bf16 %v872_v6, %v870_v40  ;;  %v1063_v56 = vld [vmem:[%s2897_s9 + $0x10] sm:$0xff]  ;;  %v1990_v40 = vmov 0.0|0.0   ;;  %v1064_v6 = vld [vmem:[%s2897_s9 + $0x18] sm:$0xff] }
 0x26c   :  { %1768 = vmatpush1.bf16.msra.mxu1 %v1767_v41  ;;  %v960_v41 = vld [vmem:[%s2899_s11 + $0x10] sm:$0xff] }
 0x26d   :  { %1770 = vmatprep.subr.bf16.mxu1 %v1769_v42  ;;  %v1801_v42 = vpack.c.bf16 %v959_v18, %v958_v16  ;;  %v2768_v16 = vld [vmem:[%s2896_s8] sm:$0x3] }
 0x26e   :  { %v879_v18 = vrot.slane %v2768_v16, %v2625_v0 }
 0x26f   :  { %1802 = vmatprep.subr.bf16.mxu0 %v1801_v42 }
 0x270   :  { %1772 = vmatpush1.bf16.msra.mxu1 %v1771_v15  ;;  %v967_v15 = vld [vmem:[%s2899_s11 + $0x48] sm:$0xff] }
 0x271   :  { %1774 = vmatprep.subr.bf16.mxu1 %v1773_v11  ;;  %v1817_v14 = vpack.c.bf16 %v967_v15, %v966_v13  ;;  %v969_v11 = vld [vmem:[%s2899_s11 + $0x58] sm:$0xff]  ;;  %v1070_v13 = vld [vmem:[%s2897_s9 + $0x48] sm:$0xff] }
 0x272   :  { %v1821_v20 = vpack.c.bf16 %v969_v11, %v968_v19  ;;  %v1072_v19 = vld [vmem:[%s2897_s9 + $0x58] sm:$0xff] }
 0x274   :  { %1776 = vmatpush1.bf16.msra.mxu1 %v1775_v26  ;;  %v971_v26 = vld [vmem:[%s2899_s11 + $0x68] sm:$0xff] }
 0x275   :  { %1778 = vmatprep.subr.bf16.mxu1 %v1777_v38  ;;  %v1825_v31 = vpack.c.bf16 %v971_v26, %v970_v25  ;;  %v1074_v25 = vld [vmem:[%s2897_s9 + $0x68] sm:$0xff] }
 0x278   :  { %1780 = vmatpush1.bf16.msra.mxu1 %v1779_v50 }
 0x279   :  { %1782 = vmatprep.subr.bf16.mxu1 %v1781_v3 }
 0x27c   :  { %1784 = vmatpush1.bf16.msra.mxu1 %v1783_v12 }
 0x27d   :  { %1786 = vmatprep.subr.bf16.mxu1 %v1785_v22  ;;  %v247_v22 = vsub.s32 3, %v2614_v61 }
 0x27f   :  { %v248_v30 = vrot.slane %v2622_v63, %v247_v22  ;;  %v1162_v22 = vld [vmem:[%s2900_s12 + $0x38] sm:$0xff] }
 0x280   :  { %1788 = vmatpush1.bf16.msra.mxu1 %v1787_v35  ;;  %v244_v35 = vrot.slane %v2622_v63, %v243_v21  ;;  %v972_v63 = vld [vmem:[%s2899_s11 + $0x70] sm:$0xff] }
 0x281   :  { %1790 = vmatprep.subr.bf16.mxu1 %v1789_v29  ;;  %v393_v61 = vadd.f32 %v2674_v37, %v248_v30  ;;  %v1062_v37 = vld [vmem:[%s2897_s9 + $0x8] sm:$0xff]  ;;  %v1161_v21 = vld [vmem:[%s2900_s12 + $0x30] sm:$0xff] }
 0x282   :  { %v391_v44 = vadd.f32 %v2672_v36, %v244_v35  ;;  %v1061_v36 = vld [vmem:[%s2897_s9] sm:$0xff]  ;;  %v1164_v35 = vld [vmem:[%s2900_s12 + $0x48] sm:$0xff] }
 0x284   :  { %1792 = vmatpush1.bf16.msra.mxu1 %v1791_v34 }
 0x285   :  { %1794 = vmatprep.subr.bf16.mxu1 %v1793_v45 }
 0x288   :  { %1796 = vmatpush1.bf16.msra.mxu1 %v1795_v52 }
 0x289   :  { %1798 = vmatprep.subr.bf16.mxu1 %v1797_v5  ;;  %v1834_v5 = vpack.c.bf16 %v1062_v37, %v1061_v36 }
 0x28c   :  { %1800 = vmatpush1.bf16.msra.mxu1 %v1799_v10  ;;  %v1837_v10 = vpack.c.bf16 %v1064_v6, %v1063_v56  ;;  %v1169_v56 = vld [vmem:[%s2900_s12 + $0x70] sm:$0xff]  ;;  %v883_v6 = vrot.slane %v2768_v16, %v2617_v62 }
 0x28d   :  { %1833 = vmatprep.subr.bf16.mxu1 %v1990_v40 }
 0x322   :  { %v702_v54 = vpop.f32.mrb[2].mxu1 }
 0x323   :  { %v704_v59 = vpop.f32.mrb[3].mxu1  ;;  %v2685_v1 = vadd.f32 %v702_v54, %v629_v53  ;;  %v962_v53 = vld [vmem:[%s2899_s11 + $0x20] sm:$0xff]  ;;  %v963_v54 = vld [vmem:[%s2899_s11 + $0x28] sm:$0xff] }
 0x324   :  { %v2683_v60 = vadd.f32 %v704_v59, %v633_v48  ;;  %v1805_v48 = vpack.c.bf16 %v961_v47, %v960_v41  ;;  %v1809_v59 = vpack.c.bf16 %v963_v54, %v962_v53  ;;  %v1065_v53 = vld [vmem:[%s2897_s9 + $0x20] sm:$0xff]  ;;  %v1066_v54 = vld [vmem:[%s2897_s9 + $0x28] sm:$0xff] }
 0x325   :  { %v708_v7 = vmul.f32 %v2685_v1, %v2685_v1  ;;  %v1840_v0 = vpack.c.bf16 %v1066_v54, %v1065_v53  ;;  %v1259_v54 = vld [vmem:[%s2901_s13] ss:$0 sm:$0xff] }
 0x326   :  { %774 = vmatprep.mubr.f32.mxu0 %v2683_v60  ;;  %v709_v2 = vmul.f32 %v2683_v60, %v2683_v60 }
 0x327   :  { %775 = vmatmul.mubr.f32.vlgmr.msra.gmra.mrb[6].mxu0 %v2685_v1 }
 0x328   :  { %780 = vmatprep.mubr.f32.mxu0 %v709_v2  ;;  %1804 = vmatpush3.bf16.msra.mxu0 %v1801_v42  ;;  %v964_v2 = vld [vmem:[%s2899_s11 + $0x30] sm:$0xff] }
 0x329   :  { %1806 = vmatprep.subr.bf16.mxu0 %v1805_v48 }
 0x32b   :  { %781 = vmatmul.mubr.f32.gmra.mrb[8].mxu0 %v708_v7  ;;  %v965_v7 = vld [vmem:[%s2899_s11 + $0x38] sm:$0xff] }
 0x32c   :  { %1808 = vmatpush3.bf16.msra.mxu0 %v1805_v48  ;;  %v1813_v8 = vpack.c.bf16 %v965_v7, %v964_v2  ;;  %v1068_v2 = vld [vmem:[%s2897_s9 + $0x38] sm:$0xff] }
 0x32d   :  { %1810 = vmatprep.subr.bf16.mxu0 %v1809_v59 }
 0x330   :  { %1812 = vmatpush3.bf16.msra.mxu0 %v1809_v59  ;;  %v1067_v59 = vld [vmem:[%s2897_s9 + $0x30] sm:$0xff] }
 0x331   :  { %1814 = vmatprep.subr.bf16.mxu0 %v1813_v8  ;;  %v1843_v7 = vpack.c.bf16 %v1068_v2, %v1067_v59 }
 0x334   :  { %1816 = vmatpush3.bf16.msra.mxu0 %v1813_v8  ;;  %v1069_v8 = vld [vmem:[%s2897_s9 + $0x40] sm:$0xff] }
 0x335   :  { %1818 = vmatprep.subr.bf16.mxu0 %v1817_v14  ;;  %v1846_v15 = vpack.c.bf16 %v1070_v13, %v1069_v8 }
 0x338   :  { %1820 = vmatpush3.bf16.msra.mxu0 %v1817_v14  ;;  %v1071_v14 = vld [vmem:[%s2897_s9 + $0x50] sm:$0xff] }
 0x339   :  { %1822 = vmatprep.subr.bf16.mxu0 %v1821_v20  ;;  %v1849_v11 = vpack.c.bf16 %v1072_v19, %v1071_v14 }
 0x33c   :  { %1824 = vmatpush3.bf16.msra.mxu0 %v1821_v20  ;;  %v1073_v20 = vld [vmem:[%s2897_s9 + $0x60] sm:$0xff] }
 0x33d   :  { %1826 = vmatprep.subr.bf16.mxu0 %v1825_v31  ;;  %v1852_v26 = vpack.c.bf16 %v1074_v25, %v1073_v20 }
 0x340   :  { %1828 = vmatpush3.bf16.msra.mxu0 %v1825_v31  ;;  %v1075_v31 = vld [vmem:[%s2897_s9 + $0x70] sm:$0xff] }
 0x3fa   :  { %v776_v32 = vpop.f32.mrb[6].mxu0 }
 0x3fb   :  { %v778_v38 = vpop.f32.mrb[7].mxu0  ;;  %v787_v39 = vmul.f32 %v776_v32, %v776_v32  ;;  %v793_v23 = vsub.f32 %v2685_v1, %v776_v32  ;;  %v1076_v32 = vld [vmem:[%s2897_s9 + $0x78] sm:$0xff] }
 0x3fc   :  { %v788_v49 = vmul.f32 %v778_v38, %v778_v38  ;;  %v794_v27 = vsub.f32 %v2683_v60, %v778_v38  ;;  %v973_v60 = vld [vmem:[%s2899_s11 + $0x78] sm:$0xff]  ;;  %v1855_v38 = vpack.c.bf16 %v1076_v32, %v1075_v31 }
 0x3fd   :  { %v1829_v55 = vpack.c.bf16 %v973_v60, %v972_v63  ;;  %v1058_v60 = vstv %s1257_s1 }
 0x3fe   :  { %v782_v50 = vpop.f32.mrb[8].mxu0 }
 0x3ff   :  { %v789_v57 = vsub.f32 %v782_v50, %v787_v39  ;;  %v784_v58 = vpop.f32.mrb[9].mxu0  ;;  %1830 = vmatprep.subr.bf16.mxu0 %v1829_v55  ;;  %v1992_v39 = vmov 0.0   ;;  %v1156_v50 = vld [vmem:[%s2900_s12 + $0x8] sm:$0xff] }
 0x400   :  { %v790_v3 = vsub.f32 %v784_v58, %v788_v49  ;;  %1832 = vmatpush3.bf16.msra.mxu0 %v1829_v55  ;;  %v1155_v49 = vld [vmem:[%s2900_s12] sm:$0xff] }
 0x401   :  { %v791_v4 = vmax.f32 %v789_v57, 0.0  ;;  %1857 = vmatprep.subr.bf16.mxu0 %v1990_v40  ;;  %v1157_v57 = vld [vmem:[%s2900_s12 + $0x10] sm:$0xff]  ;;  %v1858_v58 = vpack.c.bf16 %v1156_v50, %v1155_v49 }
 0x402   :  { %v792_v9 = vmax.f32 %v790_v3, 0.0  ;;  %v1158_v3 = vld [vmem:[%s2900_s12 + $0x18] sm:$0xff] }
 0x403   :  { %v795_v12 = vadd.f32 1e-05, %v791_v4  ;;  %v1861_v4 = vpack.c.bf16 %v1158_v3, %v1157_v57 }
 0x404   :  { %v796_v17 = vadd.f32 1e-05, %v792_v9  ;;  %v1159_v9 = vld [vmem:[%s2900_s12 + $0x20] sm:$0xff] }
 0x405   :  { %1894 = vrsqrt.f32 %v795_v12  ;;  %v1160_v12 = vld [vmem:[%s2900_s12 + $0x28] sm:$0xff] }
 0x406   :  { %1896 = vrsqrt.f32 %v796_v17  ;;  %v1864_v17 = vpack.c.bf16 %v1160_v12, %v1159_v9 }
 0x40f   :  { %v1895_v24 = vpop.eup %1894 }
 0x410   :  { %v1897_v29 = vpop.eup %1896  ;;  %v799_v33 = vmul.f32 %v1895_v24, %v793_v23  ;;  %v1867_v23 = vpack.c.bf16 %v1162_v22, %v1161_v21  ;;  %v1163_v24 = vld [vmem:[%s2900_s12 + $0x40] sm:$0xff] }
 0x411   :  { %v800_v34 = vmul.f32 %v1897_v29, %v794_v27  ;;  %v1870_v27 = vpack.c.bf16 %v1164_v35, %v1163_v24  ;;  %v1166_v29 = vld [vmem:[%s2900_s12 + $0x58] sm:$0xff] }
 0x412   :  { %v804_v43 = vmul.f32 %v803_v28, %v799_v33  ;;  %vm801_vm2 = vcmp.ge.f32.partialorder %v799_v33, 0.0 }
 0x413   :  { %vm802_vm3 = vcmp.ge.f32.partialorder %v800_v34, 0.0  ;;  %v805_v45 = vmul.f32 %v803_v28, %v800_v34  ;;  %v1165_v28 = vld [vmem:[%s2900_s12 + $0x50] sm:$0xff] }
 0x414   :  { %v806_v1 = vsel %vm801_vm2, %v799_v33, %v804_v43  ;;  %v1873_v30 = vpack.c.bf16 %v1166_v29, %v1165_v28  ;;  %v1167_v33 = vld [vmem:[%s2900_s12 + $0x60] sm:$0xff] }
 0x415   :  { %v807_v46 = vsel %vm802_vm3, %v800_v34, %v805_v45  ;;  %v808_v51 = vadd.f32 %v806_v1, %v391_v44  ;;  %v1168_v34 = vld [vmem:[%s2900_s12 + $0x68] sm:$0xff] }
 0x416   :  { %v809_v52 = vadd.f32 %v807_v46, %v393_v61  ;;  %v1876_v43 = vpack.c.bf16 %v1168_v34, %v1167_v33 }
 0x418   :  { %950 = vmatprep.mubr.f32.mxu1 %v809_v52 }
 0x419   :  { %951 = vmatmul.mubr.f32.vlgmr.msra.gmra.mrb[4].mxu1 %v808_v51 }
 0x41a   :  { %1835 = vmatpush3.bf16.msra.mxu1 %v1834_v5  ;;  %1379 = vmatprep.mubr.msk.f32.mxu1 %vm1991_vm4, %v1992_v39 }
 0x41b   :  { %1836 = vmatprep.subr.bf16.mxu1 %v1990_v40 }
 0x41e   :  { %1838 = vmatpush3.bf16.msra.mxu1 %v1837_v10  ;;  %v1258_v10 = vld [vmem:[%s2898_s10] ss:$0 sm:$0xff] }
 0x41f   :  { %1839 = vmatprep.subr.bf16.mxu1 %v1990_v40 }
 0x422   :  { %1841 = vmatpush3.bf16.msra.mxu1 %v1840_v0 }
 0x423   :  { %1842 = vmatprep.subr.bf16.mxu1 %v1990_v40 }
 0x426   :  { %1844 = vmatpush3.bf16.msra.mxu1 %v1843_v7 }
 0x427   :  { %1845 = vmatprep.subr.bf16.mxu1 %v1990_v40 }
 0x42a   :  { %1847 = vmatpush3.bf16.msra.mxu1 %v1846_v15 }
 0x42b   :  { %1848 = vmatprep.subr.bf16.mxu1 %v1990_v40 }
 0x42e   :  { %1850 = vmatpush3.bf16.msra.mxu1 %v1849_v11 }
 0x42f   :  { %1851 = vmatprep.subr.bf16.mxu1 %v1990_v40 }
 0x432   :  { %1853 = vmatpush3.bf16.msra.mxu1 %v1852_v26 }
 0x433   :  { %1854 = vmatprep.subr.bf16.mxu1 %v1990_v40 }
 0x436   :  { %1856 = vmatpush3.bf16.msra.mxu1 %v1855_v38 }
 0x4ec   :  { %v952_v41 = vpop.f32.mrb[4].mxu1 }
 0x4ed   :  { %v2772_v42 = vadd.f32 %v952_v41, %v879_v18  ;;  %v2774_v47 = vpop.f32.mrb[5].mxu1 }
 0x4ee   :  { %v955_v41 = vadd.f32 %v2774_v47, %v883_v6 }
 0x4ef   :  { %v974_v48 = vmul.f32 %v2772_v42, %v2772_v42  ;;  %1344 = vmatprep.mubr.f32.mxu0 %v2772_v42 }
 0x4f1   :  { %1345 = vmatmul.mubr.f32.vlgmr.msra.gmra.mrb[10].mxu0 %v974_v48 }
 0x4f2   :  { %1414 = vmatprep.mubr.msk.f32.mxu0 %vm1991_vm4, %v1992_v39  ;;  %1859 = vmatpush3.bf16.msra.mxu0 %v1858_v58 }
 0x4f3   :  { %1860 = vmatprep.subr.bf16.mxu0 %v1990_v40 }
 0x4f6   :  { %1862 = vmatpush3.bf16.msra.mxu0 %v1861_v4 }
 0x4f7   :  { %1863 = vmatprep.subr.bf16.mxu0 %v1990_v40 }
 0x4fa   :  { %1865 = vmatpush3.bf16.msra.mxu0 %v1864_v17 }
 0x4fb   :  { %1866 = vmatprep.subr.bf16.mxu0 %v1990_v40 }
 0x4fe   :  { %1868 = vmatpush3.bf16.msra.mxu0 %v1867_v23 }
 0x4ff   :  { %1869 = vmatprep.subr.bf16.mxu0 %v1990_v40 }
 0x502   :  { %1871 = vmatpush3.bf16.msra.mxu0 %v1870_v27 }
 0x503   :  { %1872 = vmatprep.subr.bf16.mxu0 %v1990_v40 }
 0x506   :  { %1874 = vmatpush3.bf16.msra.mxu0 %v1873_v30 }
 0x507   :  { %1875 = vmatprep.subr.bf16.mxu0 %v1990_v40 }
 0x50a   :  { %1877 = vmatpush3.bf16.msra.mxu0 %v1876_v43 }
 0x50b   :  { %1878 = vmatprep.subr.bf16.mxu0 %v1990_v40  ;;  %v1170_v40 = vld [vmem:[%s2900_s12 + $0x78] sm:$0xff] }
 0x50c   :  { %v1879_v5 = vpack.c.bf16 %v1170_v40, %v1169_v56 }
 0x50e   :  { %1880 = vmatpush3.bf16.msra.mxu0 %v1879_v5 }
 0x5c4   :  { %v1346_v44 = vpop.f32.mrb[10].mxu0 }
 0x5c5   :  { %v1041_v45 = vpop.f32.mrb[11].mxu0 }
 0x5c6   :  { %v1050_v61 = vmul.f32 %v1041_v45, %v1041_v45  ;;  %v1053_v52 = vsub.f32 %v2772_v42, %v1041_v45 }
 0x5c8   :  { %v1051_v1 = vsub.f32 %v1346_v44, %v1050_v61 }
 0x5ca   :  { %v1052_v46 = vmax.f32 %v1051_v1, 0.0 }
 0x5cc   :  { %v1054_v51 = vadd.f32 1e-05, %v1052_v46 }
 0x5ce   :  { %1898 = vrsqrt.f32 %v1054_v51 }
 0x5d8   :  { %v1899_v63 = vpop.eup %1898 }
 0x5d9   :  { %v1056_v55 = vmul.f32 %v1899_v63, %v1053_v52 }
 0x5db   :  { %vm1057_vm5 = vcmp.ge.f32.partialorder %v1056_v55, 0.0  ;;  %v1059_v36 = vmul.f32 %v1058_v60, %v1056_v55 }
 0x5dd   :  { %v1060_v37 = vsel %vm1057_vm5, %v1056_v55, %v1059_v36 }
 0x5de   :  { %1380 = vmatmul.mubr.f32.vlgmr.msra.gmra.mrb[6].mxu1 %v1060_v37 }
 0x6b1   :  { %v1150_v18 = vpop.f32.mrb[6].mxu1 }
 0x6b2   :  { %v1151_v42 = vadd.f32 %v1258_v10, %v1150_v18  ;;  %v1381_v48 = vpop.f32.mrb[7].mxu1 }
 0x6b4   :  { %v1154_v53 = vadd.f32 %v1151_v42, %v955_v41 }
 0x6b6   :  { %1415 = vmatmul.mubr.f32.vlgmr.msra.gmra.mrb[12].mxu0 %v1154_v53 }
 0x789   :  { %v1244_v0 = vpop.f32.mrb[12].mxu0 }
 0x78a   :  { %v1245_v59 = vadd.f32 %v1259_v54, %v1244_v0  ;;  %v1416_v2 = vpop.f32.mrb[13].mxu0 }
 0x78c   :  { %1248 = vst [vmem:[%s2902_s14] sm:$0xff] %v1245_v59 }
 0x78d   :  { %1253 = vsyncpa [#allocation3], 1 }
 0x78e   :  { %1254 = vsyncpa [#allocation7], 1 }
 0x78f   :  { %1255 = vsyncpa [#allocation4], 1 }

</bundles_post_ra>
